<compile_context>
chip_gen: v7x
topology: tpu7x:2x2x1
jax: 0.10.0
libtpu: 0.0.40
codegen_flags: <defaults>
</compile_context>

<pallas_src>
import jax
import jax.numpy as jnp
from jax.experimental import pallas as pl
from jax.experimental.pallas import tpu as pltpu

BN_EPS = 1e-5
PAD = 128  # lane width; state_size, hidden widths and action_size must be <= PAD


def qnetwork_kernel(x_ref, w_ref, vec_ref, out_ref):
    """x_ref: [B, S] f32 (raw, unpadded), w_ref: [4, PAD, PAD] bf16 (resident),
    vec_ref: [8, PAD] f32 (resident), out_ref: [B, PAD] f32 (lane-dense)."""
    batch, state_size = x_ref.shape
    n_inv = 1.0 / batch  # static python float (1/B)

    vec = vec_ref[...]            # one (8,128) f32 tile: all biases + BN params
    b1, g1, be1 = vec[0:1], vec[1:2], vec[2:3]
    b2, g2, be2 = vec[3:4], vec[4:5], vec[5:6]
    b3, b4 = vec[6:7], vec[7:8]

    def bn(h, gamma, beta):
        # One-pass stats in f32: biased variance via E[h^2] - mean^2, then a
        # single fused scale/shift.  Padded lanes have gamma=beta=0 exactly,
        # so they stay exactly 0 through the whole network.
        mean = jnp.sum(h, axis=0, keepdims=True) * n_inv
        mean_sq = jnp.sum(h * h, axis=0, keepdims=True) * n_inv
        var = mean_sq - mean * mean
        scale = gamma * jax.lax.rsqrt(var + BN_EPS)
        shift = beta - mean * scale
        return h * scale + shift

    # In-kernel cast (no wrapper-side pad/cast).  First matmul contracts the
    # raw state features directly against the first state_size weight rows.
    x = x_ref[...].astype(jnp.bfloat16)              # [B, S] bf16
    w1 = w_ref[0, :state_size, :]                    # [S, PAD] bf16 (static slice)

    # fc1 -> relu -> bn1
    h = jnp.dot(x, w1, preferred_element_type=jnp.float32) + b1
    h = bn(jnp.maximum(h, 0.0), g1, be1)

    # fc2 -> relu -> bn2
    h = jnp.dot(h.astype(jnp.bfloat16), w_ref[1],
                preferred_element_type=jnp.float32) + b2
    h = bn(jnp.maximum(h, 0.0), g2, be2)

    # fc3 -> relu   (bn3 exists in the module but is never used in forward)
    h = jnp.dot(h.astype(jnp.bfloat16), w_ref[2],
                preferred_element_type=jnp.float32) + b3
    h = jnp.maximum(h, 0.0)

    # fc4 (lane-dense padded output; real action values live in lanes [:action_size])
    out = jnp.dot(h.astype(jnp.bfloat16), w_ref[3],
                  preferred_element_type=jnp.float32) + b4
    out_ref[...] = out.astype(out_ref.dtype)


@jax.jit
def qnetwork_forward(x, w_slab, vec_slab):
    """x: [T, B, state_size] f32 — T independent batches of B states.
    Returns the padded [T, B, PAD] f32 Q-value slab; action values are in
    lanes [:action_size] (consume padded downstream, or slice outside the
    jitted hot path)."""
    t_steps, batch, state_size = x.shape
    pad = w_slab.shape[-1]
    return pl.pallas_call(
        qnetwork_kernel,
        out_shape=jax.ShapeDtypeStruct((t_steps, batch, pad), jnp.float32),
        grid=(t_steps,),
        in_specs=[
            # x: one batch per grid step; last two dims == full array dims.
            pl.BlockSpec((pl.Squeezed(), batch, state_size), lambda t: (t, 0, 0)),
            # weights / vec: constant block index -> DMA'd once, resident
            # across all T grid steps.
            pl.BlockSpec((4, pad, pad), lambda t: (0, 0, 0)),
            pl.BlockSpec((8, pad), lambda t: (0, 0)),
        ],
        out_specs=pl.BlockSpec((pl.Squeezed(), batch, pad), lambda t: (t, 0, 0)),
        compiler_params=pltpu.CompilerParams(
            dimension_semantics=("parallel",)),   # v7x: split T over both TCs
    )(x, w_slab, vec_slab)


def init_params(key, state_size, action_size, fc1=64, fc2=64, fc3=64):
    """nn.Linear-style init U(-1/sqrt(fan_in), 1/sqrt(fan_in)).
    Weights stored as [in_features, out_features] (transpose of PyTorch)."""
    def linear(k, fan_in, fan_out):
        kw, kb = jax.random.split(k)
        bound = 1.0 / jnp.sqrt(float(fan_in))
        w = jax.random.uniform(kw, (fan_in, fan_out), jnp.float32, -bound, bound)
        b = jax.random.uniform(kb, (fan_out,), jnp.float32, -bound, bound)
        return w, b

    k1, k2, k3, k4 = jax.random.split(key, 4)
    w1, b1 = linear(k1, state_size, fc1)
    w2, b2 = linear(k2, fc1, fc2)
    w3, b3 = linear(k3, fc2, fc3)
    w4, b4 = linear(k4, fc3, action_size)
    return dict(
        w1=w1, b1=b1, g1=jnp.ones((fc1,), jnp.float32), be1=jnp.zeros((fc1,), jnp.float32),
        w2=w2, b2=b2, g2=jnp.ones((fc2,), jnp.float32), be2=jnp.zeros((fc2,), jnp.float32),
        w3=w3, b3=b3,
        w4=w4, b4=b4,
        # bn3 params exist in the PyTorch module but are unused in forward.
    )


def pack_params(params, state_size, action_size, pad=PAD):
    """Pack all parameters into 2 slabs (fewer, larger DMAs; lane-tile aligned).
    Padded feature columns get weight=bias=gamma=beta=0 so they remain exactly 0."""
    f1, f2, f3 = params["w1"].shape[1], params["w2"].shape[1], params["w3"].shape[1]
    assert max(state_size, f1, f2, f3, action_size) <= pad, "widths must fit one lane tile"

    w = jnp.zeros((4, pad, pad), jnp.float32)
    w = w.at[0, :state_size, :f1].set(params["w1"])
    w = w.at[1, :f1, :f2].set(params["w2"])
    w = w.at[2, :f2, :f3].set(params["w3"])
    w = w.at[3, :f3, :action_size].set(params["w4"])

    vec = jnp.zeros((8, pad), jnp.float32)
    vec = vec.at[0, :f1].set(params["b1"])
    vec = vec.at[1, :f1].set(params["g1"])
    vec = vec.at[2, :f1].set(params["be1"])
    vec = vec.at[3, :f2].set(params["b2"])
    vec = vec.at[4, :f2].set(params["g2"])
    vec = vec.at[5, :f2].set(params["be2"])
    vec = vec.at[6, :f3].set(params["b3"])
    vec = vec.at[7, :action_size].set(params["b4"])

    # Invariant required for padded lanes to stay exactly 0 through BatchNorm
    # (gamma=beta=0 on padded lanes); build-time check so it can't silently rot.
    assert float(jnp.max(jnp.abs(vec[1, f1:]))) == 0.0, "padded gamma1 lanes must be 0"
    assert float(jnp.max(jnp.abs(vec[4, f2:]))) == 0.0, "padded gamma2 lanes must be 0"

    return w.astype(jnp.bfloat16), vec  # bf16 MXU operands; f32 vector params


def qnetwork_reference(x, params, matmul_dtype=jnp.float32):
    """Pure-JAX reference for ONE batch [B, state_size].  With
    matmul_dtype=bf16 it mirrors the kernel's precision choices exactly;
    with f32 it is the plain PyTorch-semantics math."""
    n_inv = 1.0 / x.shape[0]

    def mm(a, w):
        return jnp.dot(a.astype(matmul_dtype), w.astype(matmul_dtype),
                       preferred_element_type=jnp.float32)

    def bn(h, g, b):
        mean = jnp.sum(h, axis=0, keepdims=True) * n_inv
        mean_sq = jnp.sum(h * h, axis=0, keepdims=True) * n_inv
        var = mean_sq - mean * mean
        scale = g * jax.lax.rsqrt(var + BN_EPS)
        return h * scale + (b - mean * scale)

    h = jnp.maximum(mm(x, params["w1"]) + params["b1"], 0.0)
    h = bn(h, params["g1"], params["be1"])
    h = jnp.maximum(mm(h, params["w2"]) + params["b2"], 0.0)
    h = bn(h, params["g2"], params["be2"])
    h = jnp.maximum(mm(h, params["w3"]) + params["b3"], 0.0)
    return mm(h, params["w4"]) + params["b4"]


if __name__ == "__main__":
    state_size = 8
    action_size = 4
    batch = 256   # per-grid-step batch (multiple of 8 sublanes); scales further if desired
    t_steps = 4   # number of batches amortized over one kernel launch / one weight DMA

    key = jax.random.PRNGKey(0)
    kx, kp = jax.random.split(key)
    x = jax.random.normal(kx, (t_steps, batch, state_size), dtype=jnp.float32)
    params = init_params(kp, state_size, action_size)
    w_slab, vec_slab = pack_params(params, state_size, action_size)  # built once, reused

    out_pad = qnetwork_forward(x, w_slab, vec_slab)   # [T, B, PAD] padded slab
    out_pad = jax.block_until_ready(out_pad)
    assert out_pad.shape == (t_steps, batch, PAD)

    # Verification only (outside the jitted hot path): extract action values.
    out = out_pad[:, :, :action_size]

    # Padded lanes must remain (numerically) zero.
    assert float(jnp.max(jnp.abs(out_pad[:, :, action_size:]))) < 1e-6, "padded lanes nonzero"

    # Exact-math check: reference with the same bf16 MXU operands / f32 accum,
    # applied per grid step t (each t is its own BatchNorm batch).
    ref_match = jax.vmap(
        lambda xt: qnetwork_reference(xt, params, matmul_dtype=jnp.bfloat16))(x)
    assert jnp.allclose(out, ref_match, atol=2e-3, rtol=2e-3), "mismatch vs matched reference"

    # Sanity bound vs. the full-f32 spec reference (bf16 operands => looser tol).
    ref_f32 = jax.vmap(
        lambda xt: qnetwork_reference(xt, params, matmul_dtype=jnp.float32))(x)
    assert float(jnp.max(jnp.abs(out - ref_f32))) < 0.15, "drift vs f32 reference too large"

    print("KERNEL_OK")
</pallas_src>

<mosaic_0001>
module attributes {stable_mosaic.version = 11 : i64} {
  func.func @qnetwork_kernel(%arg0: i32, %arg1: memref<1x256x8xf32, #tpu.memory_space<vmem>>, %arg2: memref<4x128x128xbf16, #tpu.memory_space<vmem>>, %arg3: memref<8x128xf32, #tpu.memory_space<vmem>>, %arg4: memref<1x256x128xf32, #tpu.memory_space<vmem>>) attributes {dimension_semantics = [#tpu.dimension_semantics<parallel>], iteration_bounds = array<i64: 4>, scalar_prefetch = 0 : i64, scratch_operands = 0 : i64, tpu.core_type = #tpu.core_type<tc>, window_params = [{transform_indices = @transform_0, window_bounds = array<i64: 1, 256, 8>}, {pipeline_mode = #tpu.pipeline_mode<synchronous>, transform_indices = @transform_1, window_bounds = array<i64: 4, 128, 128>}, {pipeline_mode = #tpu.pipeline_mode<synchronous>, transform_indices = @transform_2, window_bounds = array<i64: 8, 128>}, {transform_indices = @transform_3, window_bounds = array<i64: 1, 256, 128>}]} {
    %c0 = arith.constant 0 : index
    %c0_0 = arith.constant 0 : index
    %0 = vector.load %arg3[%c0, %c0_0] : memref<8x128xf32, #tpu.memory_space<vmem>>, vector<8x128xf32>
    %1 = vector.extract_strided_slice %0 {offsets = [0, 0], sizes = [1, 128], strides = [1, 1]} : vector<8x128xf32> to vector<1x128xf32>
    %2 = vector.extract_strided_slice %0 {offsets = [1, 0], sizes = [1, 128], strides = [1, 1]} : vector<8x128xf32> to vector<1x128xf32>
    %3 = vector.extract_strided_slice %0 {offsets = [2, 0], sizes = [1, 128], strides = [1, 1]} : vector<8x128xf32> to vector<1x128xf32>
    %4 = vector.extract_strided_slice %0 {offsets = [3, 0], sizes = [1, 128], strides = [1, 1]} : vector<8x128xf32> to vector<1x128xf32>
    %5 = vector.extract_strided_slice %0 {offsets = [4, 0], sizes = [1, 128], strides = [1, 1]} : vector<8x128xf32> to vector<1x128xf32>
    %6 = vector.extract_strided_slice %0 {offsets = [5, 0], sizes = [1, 128], strides = [1, 1]} : vector<8x128xf32> to vector<1x128xf32>
    %7 = vector.extract_strided_slice %0 {offsets = [6, 0], sizes = [1, 128], strides = [1, 1]} : vector<8x128xf32> to vector<1x128xf32>
    %8 = vector.extract_strided_slice %0 {offsets = [7, 0], sizes = [1, 128], strides = [1, 1]} : vector<8x128xf32> to vector<1x128xf32>
    %c0_1 = arith.constant 0 : index
    %c0_2 = arith.constant 0 : index
    %c0_3 = arith.constant 0 : index
    %9 = vector.load %arg1[%c0_1, %c0_2, %c0_3] : memref<1x256x8xf32, #tpu.memory_space<vmem>>, vector<1x256x8xf32>
    %10 = vector.shape_cast %9 : vector<1x256x8xf32> to vector<256x8xf32>
    %11 = arith.truncf %10 : vector<256x8xf32> to vector<256x8xbf16>
    %c0_4 = arith.constant 0 : index
    %c0_5 = arith.constant 0 : index
    %c0_6 = arith.constant 0 : index
    %12 = vector.load %arg2[%c0_4, %c0_5, %c0_6] : memref<4x128x128xbf16, #tpu.memory_space<vmem>>, vector<1x8x128xbf16>
    %13 = vector.shape_cast %12 : vector<1x8x128xbf16> to vector<8x128xbf16>
    %cst = arith.constant dense<0.000000e+00> : vector<256x128xf32>
    %14 = tpu.matmul %11, %13, %cst {dimension_numbers = #tpu.dot_dimension_numbers<[1], [0], [0], [1], [0, 0, 1, 1], [], []>} : vector<256x8xbf16>, vector<8x128xbf16>, vector<256x128xf32> -> vector<256x128xf32>
    %15 = vector.broadcast %1 : vector<1x128xf32> to vector<256x128xf32>
    %16 = arith.addf %14, %15 : vector<256x128xf32>
    %cst_7 = arith.constant 0.000000e+00 : f32
    %17 = vector.broadcast %cst_7 : f32 to vector<256x128xf32>
    %18 = arith.maximumf %16, %17 : vector<256x128xf32>
    %cst_8 = arith.constant dense<0.000000e+00> : vector<128xf32>
    %19 = vector.multi_reduction <add>, %18, %cst_8 [0] : vector<256x128xf32> to vector<128xf32>
    %20 = vector.shape_cast %19 : vector<128xf32> to vector<1x128xf32>
    %cst_9 = arith.constant 3.906250e-03 : f32
    %21 = vector.broadcast %cst_9 : f32 to vector<1x128xf32>
    %22 = arith.mulf %20, %21 : vector<1x128xf32>
    %23 = arith.mulf %18, %18 : vector<256x128xf32>
    %cst_10 = arith.constant dense<0.000000e+00> : vector<128xf32>
    %24 = vector.multi_reduction <add>, %23, %cst_10 [0] : vector<256x128xf32> to vector<128xf32>
    %25 = vector.shape_cast %24 : vector<128xf32> to vector<1x128xf32>
    %cst_11 = arith.constant 3.906250e-03 : f32
    %26 = vector.broadcast %cst_11 : f32 to vector<1x128xf32>
    %27 = arith.mulf %25, %26 : vector<1x128xf32>
    %28 = arith.mulf %22, %22 : vector<1x128xf32>
    %29 = arith.subf %27, %28 : vector<1x128xf32>
    %cst_12 = arith.constant 9.99999974E-6 : f32
    %30 = vector.broadcast %cst_12 : f32 to vector<1x128xf32>
    %31 = arith.addf %29, %30 : vector<1x128xf32>
    %32 = math.rsqrt %31 : vector<1x128xf32>
    %33 = arith.mulf %2, %32 : vector<1x128xf32>
    %34 = arith.mulf %22, %33 : vector<1x128xf32>
    %35 = arith.subf %3, %34 : vector<1x128xf32>
    %36 = vector.broadcast %33 : vector<1x128xf32> to vector<256x128xf32>
    %37 = arith.mulf %18, %36 : vector<256x128xf32>
    %38 = vector.broadcast %35 : vector<1x128xf32> to vector<256x128xf32>
    %39 = arith.addf %37, %38 : vector<256x128xf32>
    %40 = arith.truncf %39 : vector<256x128xf32> to vector<256x128xbf16>
    %c1 = arith.constant 1 : index
    %c0_13 = arith.constant 0 : index
    %c0_14 = arith.constant 0 : index
    %41 = vector.load %arg2[%c1, %c0_13, %c0_14] : memref<4x128x128xbf16, #tpu.memory_space<vmem>>, vector<1x128x128xbf16>
    %42 = vector.shape_cast %41 : vector<1x128x128xbf16> to vector<128x128xbf16>
    %cst_15 = arith.constant dense<0.000000e+00> : vector<256x128xf32>
    %43 = tpu.matmul %40, %42, %cst_15 {dimension_numbers = #tpu.dot_dimension_numbers<[1], [0], [0], [1], [0, 0, 1, 1], [], []>} : vector<256x128xbf16>, vector<128x128xbf16>, vector<256x128xf32> -> vector<256x128xf32>
    %44 = vector.broadcast %4 : vector<1x128xf32> to vector<256x128xf32>
    %45 = arith.addf %43, %44 : vector<256x128xf32>
    %cst_16 = arith.constant 0.000000e+00 : f32
    %46 = vector.broadcast %cst_16 : f32 to vector<256x128xf32>
    %47 = arith.maximumf %45, %46 : vector<256x128xf32>
    %cst_17 = arith.constant dense<0.000000e+00> : vector<128xf32>
    %48 = vector.multi_reduction <add>, %47, %cst_17 [0] : vector<256x128xf32> to vector<128xf32>
    %49 = vector.shape_cast %48 : vector<128xf32> to vector<1x128xf32>
    %cst_18 = arith.constant 3.906250e-03 : f32
    %50 = vector.broadcast %cst_18 : f32 to vector<1x128xf32>
    %51 = arith.mulf %49, %50 : vector<1x128xf32>
    %52 = arith.mulf %47, %47 : vector<256x128xf32>
    %cst_19 = arith.constant dense<0.000000e+00> : vector<128xf32>
    %53 = vector.multi_reduction <add>, %52, %cst_19 [0] : vector<256x128xf32> to vector<128xf32>
    %54 = vector.shape_cast %53 : vector<128xf32> to vector<1x128xf32>
    %cst_20 = arith.constant 3.906250e-03 : f32
    %55 = vector.broadcast %cst_20 : f32 to vector<1x128xf32>
    %56 = arith.mulf %54, %55 : vector<1x128xf32>
    %57 = arith.mulf %51, %51 : vector<1x128xf32>
    %58 = arith.subf %56, %57 : vector<1x128xf32>
    %cst_21 = arith.constant 9.99999974E-6 : f32
    %59 = vector.broadcast %cst_21 : f32 to vector<1x128xf32>
    %60 = arith.addf %58, %59 : vector<1x128xf32>
    %61 = math.rsqrt %60 : vector<1x128xf32>
    %62 = arith.mulf %5, %61 : vector<1x128xf32>
    %63 = arith.mulf %51, %62 : vector<1x128xf32>
    %64 = arith.subf %6, %63 : vector<1x128xf32>
    %65 = vector.broadcast %62 : vector<1x128xf32> to vector<256x128xf32>
    %66 = arith.mulf %47, %65 : vector<256x128xf32>
    %67 = vector.broadcast %64 : vector<1x128xf32> to vector<256x128xf32>
    %68 = arith.addf %66, %67 : vector<256x128xf32>
    %69 = arith.truncf %68 : vector<256x128xf32> to vector<256x128xbf16>
    %c2 = arith.constant 2 : index
    %c0_22 = arith.constant 0 : index
    %c0_23 = arith.constant 0 : index
    %70 = vector.load %arg2[%c2, %c0_22, %c0_23] : memref<4x128x128xbf16, #tpu.memory_space<vmem>>, vector<1x128x128xbf16>
    %71 = vector.shape_cast %70 : vector<1x128x128xbf16> to vector<128x128xbf16>
    %cst_24 = arith.constant dense<0.000000e+00> : vector<256x128xf32>
    %72 = tpu.matmul %69, %71, %cst_24 {dimension_numbers = #tpu.dot_dimension_numbers<[1], [0], [0], [1], [0, 0, 1, 1], [], []>} : vector<256x128xbf16>, vector<128x128xbf16>, vector<256x128xf32> -> vector<256x128xf32>
    %73 = vector.broadcast %7 : vector<1x128xf32> to vector<256x128xf32>
    %74 = arith.addf %72, %73 : vector<256x128xf32>
    %cst_25 = arith.constant 0.000000e+00 : f32
    %75 = vector.broadcast %cst_25 : f32 to vector<256x128xf32>
    %76 = arith.maximumf %74, %75 : vector<256x128xf32>
    %77 = arith.truncf %76 : vector<256x128xf32> to vector<256x128xbf16>
    %c3 = arith.constant 3 : index
    %c0_26 = arith.constant 0 : index
    %c0_27 = arith.constant 0 : index
    %78 = vector.load %arg2[%c3, %c0_26, %c0_27] : memref<4x128x128xbf16, #tpu.memory_space<vmem>>, vector<1x128x128xbf16>
    %79 = vector.shape_cast %78 : vector<1x128x128xbf16> to vector<128x128xbf16>
    %cst_28 = arith.constant dense<0.000000e+00> : vector<256x128xf32>
    %80 = tpu.matmul %77, %79, %cst_28 {dimension_numbers = #tpu.dot_dimension_numbers<[1], [0], [0], [1], [0, 0, 1, 1], [], []>} : vector<256x128xbf16>, vector<128x128xbf16>, vector<256x128xf32> -> vector<256x128xf32>
    %81 = vector.broadcast %8 : vector<1x128xf32> to vector<256x128xf32>
    %82 = arith.addf %80, %81 : vector<256x128xf32>
    %c0_29 = arith.constant 0 : index
    %c0_30 = arith.constant 0 : index
    %c0_31 = arith.constant 0 : index
    %83 = vector.load %arg4[%c0_29, %c0_30, %c0_31] : memref<1x256x128xf32, #tpu.memory_space<vmem>>, vector<1x256x128xf32>
    %84 = vector.shape_cast %83 : vector<1x256x128xf32> to vector<256x128xf32>
    %85 = vector.shape_cast %82 : vector<256x128xf32> to vector<1x256x128xf32>
    tpu.vector_store %arg4[%c0_29, %c0_30, %c0_31], %85 {strides = array<i32>} : memref<1x256x128xf32, #tpu.memory_space<vmem>>, vector<1x256x128xf32>,
    return
  }
  func.func @transform_0(%arg0: i32) -> (i32, i32, i32) {
    %c0_i32 = arith.constant 0 : i32
    %c0_i32_0 = arith.constant 0 : i32
    %c0_i32_1 = arith.constant 0 : i32
    return %arg0, %c0_i32, %c0_i32_0 : i32, i32, i32
  }
  func.func @transform_1(%arg0: i32) -> (i32, i32, i32) {
    %c0_i32 = arith.constant 0 : i32
    %c0_i32_0 = arith.constant 0 : i32
    %c0_i32_1 = arith.constant 0 : i32
    %c0_i32_2 = arith.constant 0 : i32
    return %c0_i32, %c0_i32_0, %c0_i32_1 : i32, i32, i32
  }
  func.func @transform_2(%arg0: i32) -> (i32, i32) {
    %c0_i32 = arith.constant 0 : i32
    %c0_i32_0 = arith.constant 0 : i32
    %c0_i32_1 = arith.constant 0 : i32
    return %c0_i32, %c0_i32_0 : i32, i32
  }
  func.func @transform_3(%arg0: i32) -> (i32, i32, i32) {
    %c0_i32 = arith.constant 0 : i32
    %c0_i32_0 = arith.constant 0 : i32
    %c0_i32_1 = arith.constant 0 : i32
    return %arg0, %c0_i32, %c0_i32_0 : i32, i32, i32
  }
}

</mosaic_0001>

<bundles_post_ra>
// kernel: qnetwork_forward.1
= control target key start
LH: loop header
LB: loop body
LE: loop exit
PB: predicated region body
PF: predicated region fallthrough
CT: control target
= control target key end

     0   :  { %8 = vsyncpa [#allocation3], 0  ;;  %s3216_s0 = inlined_call_operand.vmem [shape: f32[4,256,8], index: 0, kind: input, shape index: {}]   ;;  %s3217_s1 = inlined_call_operand.vmem [shape: bf16[4,128,128], index: 1, kind: input, shape index: {}]   ;;  %s3218_s2 = inlined_call_operand.vmem [shape: f32[8,128], index: 2, kind: input, shape index: {}]   ;;  %s3219_s3 = inlined_call_operand.hbm [shape: f32[4,256,128], index: 3, kind: output, shape index: {}]  }
   0x1   :  { %10 = vsyncpa [#allocation3 + $0x1], 0  ;;  %s2303_s12 = smov 0   ;;  %s2305_s13 = smov 0  }
   0x2   :  { %s2307_s14 = smov 0   ;;  %s2309_s15 = smov 0  }
   0x3 LB: > { %s2324_s16 = sadd.s32 4294967295, %s2278_s15   ;;  %s1760_s17 = sadd.s32 4294967294, %s2278_s15   ;;  %s2278_s15 = sphi %s2309_s15, %s3225_s15   ;;  %s2274_s14 = sphi %s2307_s14, %s3224_s14   ;;  %s2270_s13 = sphi %s2305_s13, %s3223_s13   ;;  %s2266_s12 = sphi %s2303_s12, %s3222_s12  }
   0x4   : > { %s2328_s18 = sadd.s32 1, %s2278_s15   ;;  %s91_s19 = sadd.s32 1, %s2274_s14 }
   0x5   : > { %s88_s20 = ssub.s32 %s2278_s15, %s2328_s18  ;;  %p101_p0 = scmp.ne.s32.totalorder %s2274_s14, %s2270_s13 }
   0x6   : > { %p89_p1 = scmp.eq.s32.totalorder %s88_s20, 0  ;;  %p102_p2 = scmp.eq.s32.totalorder %s2324_s16, 3 }
   0x7   : > { %p107_p3 = scmp.ne.s32.totalorder %s2270_s13, %s2266_s12  ;;  %p108_p4 = scmp.eq.s32.totalorder %s1760_s17, 3 }
   0x8   : > { %s2339_s21 = scalar_select %p89_p1, %s2274_s14, %s91_s19  }
   0x9   : > { %p2341_p5 = por %p102_p2, %p101_p0  ;;  %p2345_p6 = por %p108_p4, %p107_p3 }
   0xa   : > { %p1763_p7 = scmp.ge.s32.totalorder %s2278_s15, 1  ;;  %p140_p8 = scmp.lt.s32.totalorder %s2278_s15, 5 }
   0xc   : > { %p141_p9 = pnand %p1763_p7, %p140_p8 }
   0xd   : > { %v219_v0 = vld [vmem:[%s3217_s1] sm:$0xf] (!%p141_p9)  ;;  %vm273_vm0 = vcmask (!%p141_p9), 1043456   ;;  %p164_p10 = scmp.lt.s32.totalorder (!%p141_p9), %s2324_s16, 3  ;;  %vm224_vm1 = vcmask (!%p141_p9), 64512   ;;  %v2188_v51 = vld [vmem:[%s3217_s1 + $0x48] sm:$0xff] (!%p141_p9)   ;;  %v220_v57 = vlaneseq (!%p141_p9) }
   0xe   : > { %144 = sbr.rel (%p141_p9) target bundleno = 1200 (0x4b0), region = 32  ;;  %2145 = vmatprep.subr.msk.bf16.mxu0 (!%p141_p9), %vm273_vm0, %v219_v0  ;;  %v275_v1 = vsel (!%p141_p9), %vm273_vm0, %v219_v0, 0  ;;  %v2187_v50 = vld [vmem:[%s3217_s1 + $0x40] sm:$0xff] (!%p141_p9)   ;;  %v2189_v52 = vld [vmem:[%s3217_s1 + $0x50] sm:$0xff] (!%p141_p9)   ;;  %v2190_v53 = vld [vmem:[%s3217_s1 + $0x58] sm:$0xff] (!%p141_p9)   ;;  %s161_s29 = sand.u32 (!%p141_p9), 1, %s2270_s13  }
   0xf   : > { %1952 = vmatpush3.bf16.msra.mxu0 (!%p141_p9), %v275_v1  ;;  %1985 = vmatprep.subr.bf16.mxu1 (!%p141_p9), %v2187_v50  ;;  %v2191_v54 = vld [vmem:[%s3217_s1 + $0x60] sm:$0xff] (!%p141_p9)   ;;  %v2192_v55 = vld [vmem:[%s3217_s1 + $0x68] sm:$0xff] (!%p141_p9)   ;;  %v2193_v56 = vld [vmem:[%s3217_s1 + $0x70] sm:$0xff] (!%p141_p9)   ;;  %v2433_v59 = vshrl.u32 (!%p141_p9), %v220_v57, 7  ;;  %s1861_s5 = sshll.u32 (!%p141_p9), %s2324_s16, 12  ;;  %s2280_s11 = smov (!%p141_p9), [#allocation2]  }
  0x10   : > { %1986 = vmatpush3.bf16.msra.mxu1 (!%p141_p9), %v2187_v50  ;;  %v2194_v58 = vld [vmem:[%s3217_s1 + $0x78] sm:$0xff] (!%p141_p9)   ;;  %v2439_v61 = vld [vmem:[%s3218_s2] sm:$0xff] (!%p141_p9)  ;;  %s3165_s9 = scalar_lea.hbm (!%p141_p9), %s3219_s3, %s1861_s5  ;;  %s2220_s17 = sshll.u32 (!%p141_p9), %s2280_s11, 4  ;;  %s2221_s17 = int_to_ptr.vmem [resolvable:$false] %s2220_s17 }
  0x11   : > { %1987 = vmatprep.subr.bf16.mxu1 (!%p141_p9), %v2188_v51  ;;  %v222_v60 = vsub.s32 (!%p141_p9), 0, %v2433_v59  ;;  %s2222_s19 = scalar_lea.vmem (!%p141_p9), %s2221_s17, 8192 }
  0x13   : > { %v2442_v62 = vrot.slane (!%p141_p9), %v2439_v61, %v222_v60 }
  0x14   : > { %1988 = vmatpush3.bf16.msra.mxu1 (!%p141_p9), %v2188_v51 }
  0x15   : > { %s165_s26 = scalar_select %p164_p10, %s2324_s16, 3  ;;  %1989 = vmatprep.subr.bf16.mxu1 %v2189_v52 }
  0x16   : > { %s3175_s16 = scalar_lea.sflag [#allocation3], %s161_s29 }
  0x17   : > { %s1860_s27 = sshll.u32 %s165_s26, 8 }
  0x18   : > { %s2359_s30 = scalar_lea.vmem %s3216_s0, %s1860_s27  ;;  %1990 = vmatpush3.bf16.msra.mxu1 %v2189_v52 }
  0x19   : > { %v171_v2 = vld [vmem:[%s2359_s30] sm:$0xff]  ;;  %v172_v3 = vld [vmem:[%s2359_s30 + $0x8] sm:$0xff]  ;;  %v173_v4 = vld [vmem:[%s2359_s30 + $0x10] sm:$0xff]  ;;  %1991 = vmatprep.subr.bf16.mxu1 %v2190_v53 }
  0x1a   : > { %v203_v5 = vpack.c.bf16 %v172_v3, %v171_v2  ;;  %v174_v6 = vld [vmem:[%s2359_s30 + $0x18] sm:$0xff]  ;;  %v175_v7 = vld [vmem:[%s2359_s30 + $0x20] sm:$0xff]  ;;  %v176_v8 = vld [vmem:[%s2359_s30 + $0x28] sm:$0xff] }
  0x1b   : > { %v204_v9 = vpack.c.bf16 %v174_v6, %v173_v4  ;;  %v205_v10 = vpack.c.bf16 %v176_v8, %v175_v7  ;;  %v177_v11 = vld [vmem:[%s2359_s30 + $0x30] sm:$0xff]  ;;  %v178_v12 = vld [vmem:[%s2359_s30 + $0x38] sm:$0xff]  ;;  %v179_v13 = vld [vmem:[%s2359_s30 + $0x40] sm:$0xff] }
  0x1c   : > { %1953 = vmatprep.mubr.msk.bf16.mxu0 %vm224_vm1, %v203_v5  ;;  %v180_v14 = vld [vmem:[%s2359_s30 + $0x48] sm:$0xff]  ;;  %v206_v15 = vpack.c.bf16 %v178_v12, %v177_v11  ;;  %v181_v17 = vld [vmem:[%s2359_s30 + $0x50] sm:$0xff]  ;;  %v182_v18 = vld [vmem:[%s2359_s30 + $0x58] sm:$0xff]  ;;  %1992 = vmatpush3.bf16.msra.mxu1 %v2190_v53 }
  0x1d   : > { %1954 = vmatmul.mubr.msk.bf16.vlgmr.msra.gmra.mrb[0].mxu0 %vm224_vm1, %v204_v9  ;;  %v207_v16 = vpack.c.bf16 %v180_v14, %v179_v13  ;;  %v183_v19 = vld [vmem:[%s2359_s30 + $0x60] sm:$0xff]  ;;  %v184_v20 = vld [vmem:[%s2359_s30 + $0x68] sm:$0xff]  ;;  %v208_v21 = vpack.c.bf16 %v182_v18, %v181_v17  ;;  %v185_v23 = vld [vmem:[%s2359_s30 + $0x70] sm:$0xff]  ;;  %1993 = vmatprep.subr.bf16.mxu1 %v2191_v54 }
  0x1e   : > { %1957 = vmatprep.mubr.msk.bf16.mxu0 %vm224_vm1, %v205_v10  ;;  %v209_v22 = vpack.c.bf16 %v184_v20, %v183_v19  ;;  %v186_v24 = vld [vmem:[%s2359_s30 + $0x78] sm:$0xff]  ;;  %v187_v25 = vld [vmem:[%s2359_s30 + $0x80] sm:$0xff]  ;;  %v188_v26 = vld [vmem:[%s2359_s30 + $0x88] sm:$0xff] }
  0x1f   : > { %v210_v27 = vpack.c.bf16 %v186_v24, %v185_v23  ;;  %v211_v28 = vpack.c.bf16 %v188_v26, %v187_v25  ;;  %v189_v29 = vld [vmem:[%s2359_s30 + $0x90] sm:$0xff]  ;;  %v190_v30 = vld [vmem:[%s2359_s30 + $0x98] sm:$0xff]  ;;  %v191_v31 = vld [vmem:[%s2359_s30 + $0xa0] sm:$0xff] }
  0x20   : > { %v192_v32 = vld [vmem:[%s2359_s30 + $0xa8] sm:$0xff]  ;;  %v212_v33 = vpack.c.bf16 %v190_v30, %v189_v29  ;;  %v193_v35 = vld [vmem:[%s2359_s30 + $0xb0] sm:$0xff]  ;;  %v194_v36 = vld [vmem:[%s2359_s30 + $0xb8] sm:$0xff]  ;;  %1994 = vmatpush3.bf16.msra.mxu1 %v2191_v54 }
  0x21   : > { %v213_v34 = vpack.c.bf16 %v192_v32, %v191_v31  ;;  %v195_v37 = vld [vmem:[%s2359_s30 + $0xc0] sm:$0xff]  ;;  %v196_v38 = vld [vmem:[%s2359_s30 + $0xc8] sm:$0xff]  ;;  %v214_v39 = vpack.c.bf16 %v194_v36, %v193_v35  ;;  %v197_v41 = vld [vmem:[%s2359_s30 + $0xd0] sm:$0xff]  ;;  %1995 = vmatprep.subr.bf16.mxu1 %v2192_v55 }
  0x22   : > { %v215_v40 = vpack.c.bf16 %v196_v38, %v195_v37  ;;  %v198_v42 = vld [vmem:[%s2359_s30 + $0xd8] sm:$0xff]  ;;  %v199_v43 = vld [vmem:[%s2359_s30 + $0xe0] sm:$0xff]  ;;  %v200_v44 = vld [vmem:[%s2359_s30 + $0xe8] sm:$0xff] }
  0x23   : > { %v216_v45 = vpack.c.bf16 %v198_v42, %v197_v41  ;;  %v217_v46 = vpack.c.bf16 %v200_v44, %v199_v43  ;;  %v201_v47 = vld [vmem:[%s2359_s30 + $0xf0] sm:$0xff]  ;;  %v202_v48 = vld [vmem:[%s2359_s30 + $0xf8] sm:$0xff]  ;;  %s1764_s30 = sshll.u32 %s161_s29, 8 }
  0x24   : > { %v218_v49 = vpack.c.bf16 %v202_v48, %v201_v47  ;;  %1996 = vmatpush3.bf16.msra.mxu1 %v2192_v55  ;;  %s3100_s4 = scalar_lea.vmem [#allocation2], %s1764_s30 }
  0x25   : > { %1958 = vmatmul.mubr.msk.bf16.gmra.mrb[4].mxu0 %vm224_vm1, %v206_v15  ;;  %1997 = vmatprep.subr.bf16.mxu1 %v2193_v56  ;;  %s1698_s6 = sshll.u32 %s3100_s4, 4  ;;  %s3167_s6 = int_to_ptr.vmem [resolvable:$true] %s1698_s6 }
  0x26   : > { %1961 = vmatprep.mubr.msk.bf16.mxu0 %vm224_vm1, %v207_v16  ;;  %s2216_s10 = scalar_lea.vmem %s3167_s6, 4096  ;;  %p2223_p0 = scmp.lt.s32.totalorder %s3167_s6, %s2221_s17 }
  0x27   : > { %p2217_p11 = scmp.ne.s32.totalorder %s3167_s6, %s2216_s10  ;;  %p2224_p1 = scmp.lt.s32.totalorder %s2222_s19, %s2216_s10 }
  0x28   : > { %1998 = vmatpush3.bf16.msra.mxu1 %v2193_v56 }
  0x29   : > { %1999 = vmatprep.subr.bf16.mxu1 %v2194_v58  ;;  %p2218_p12 = pnand %p2217_p11, %p2341_p5  ;;  %p2225_p2 = por %p2224_p1, %p2223_p0 }
  0x2b   : > { %p2219_p13 = pneg %p2218_p12 }
  0x2c   : > { %2000 = vmatpush3.bf16.msra.mxu1 %v2194_v58 }
  0x2d   : > { %1962 = vmatmul.mubr.msk.bf16.gmra.mrb[8].mxu0 %vm224_vm1, %v208_v21  ;;  %p2226_p3 = pnand %p2225_p2, %p2219_p13 }
  0x2e   : > { %1965 = vmatprep.mubr.msk.bf16.mxu0 %vm224_vm1, %v209_v22 }
  0x35   : > { %1966 = vmatmul.mubr.msk.bf16.gmra.mrb[12].mxu0 %vm224_vm1, %v210_v27 }
  0x36   : > { %1969 = vmatprep.mubr.msk.bf16.mxu0 %vm224_vm1, %v211_v28 }
  0x3d   : > { %1970 = vmatmul.mubr.msk.bf16.gmra.mrb[16].mxu0 %vm224_vm1, %v212_v33 }
  0x3e   : > { %1973 = vmatprep.mubr.msk.bf16.mxu0 %vm224_vm1, %v213_v34 }
  0x45   : > { %1974 = vmatmul.mubr.msk.bf16.gmra.mrb[20].mxu0 %vm224_vm1, %v214_v39 }
  0x46   : > { %1977 = vmatprep.mubr.msk.bf16.mxu0 %vm224_vm1, %v215_v40 }
  0x4d   : > { %1978 = vmatmul.mubr.msk.bf16.gmra.mrb[24].mxu0 %vm224_vm1, %v216_v45 }
  0x4e   : > { %1981 = vmatprep.mubr.msk.bf16.mxu0 %vm224_vm1, %v217_v46 }
  0x55   : > { %1982 = vmatmul.mubr.msk.bf16.gmra.mrb[28].mxu0 %vm224_vm1, %v218_v49 }
  0xf0   : > { %v1955_v63 = vpop.f32.mrb[0].mxu0 }
  0xf1   : > { %v311_v0 = vpop.f32.mrb[1].mxu0  ;;  %v320_v1 = vadd.f32 %v1955_v63, %v2442_v62 }
  0xf2   : > { %v312_v2 = vadd.f32 %v311_v0, %v2442_v62  ;;  %v1956_v3 = vpop.f32.mrb[2].mxu0 }
  0xf3   : > { %v323_v4 = vadd.f32 %v1956_v3, %v2442_v62  ;;  %v314_v5 = vpop.f32.mrb[3].mxu0  ;;  %v2450_v8 = vmax.f32 %v320_v1, 0.0 }
  0xf4   : > { %v2447_v6 = vmax.f32 %v312_v2, 0.0  ;;  %v315_v7 = vadd.f32 %v314_v5, %v2442_v62 }
  0xf5   : > { %v2454_v10 = vmax.f32 %v323_v4, 0.0  ;;  %v510_v17 = vmul.f32 %v2450_v8, %v2450_v8 }
  0xf6   : > { %v2452_v9 = vmax.f32 %v315_v7, 0.0  ;;  %v508_v11 = vmul.f32 %v2447_v6, %v2447_v6 }
  0xf7   : > { %v511_v22 = vmul.f32 %v2454_v10, %v2454_v10 }
  0xf8   : > { %v470_v12 = vadd.f32 %v2452_v9, %v2447_v6  ;;  %v509_v13 = vmul.f32 %v2452_v9, %v2452_v9  ;;  %v1959_v14 = vpop.f32.mrb[4].mxu0 }
  0xf9   : > { %v336_v15 = vadd.f32 %v1959_v14, %v2442_v62  ;;  %v327_v16 = vpop.f32.mrb[5].mxu0 }
  0xfa   : > { %v471_v18 = vadd.f32 %v470_v12, %v2450_v8  ;;  %v540_v19 = vadd.f32 %v509_v13, %v508_v11  ;;  %v328_v20 = vadd.f32 %v327_v16, %v2442_v62  ;;  %v1960_v21 = vpop.f32.mrb[6].mxu0 }
  0xfb   : > { %v339_v23 = vadd.f32 %v1960_v21, %v2442_v62  ;;  %v330_v24 = vpop.f32.mrb[7].mxu0  ;;  %v2474_v29 = vmax.f32 %v336_v15, 0.0 }
  0xfc   : > { %v541_v25 = vadd.f32 %v540_v19, %v510_v17  ;;  %v2470_v26 = vmax.f32 %v328_v20, 0.0  ;;  %v472_v27 = vadd.f32 %v471_v18, %v2454_v10  ;;  %v331_v28 = vadd.f32 %v330_v24, %v2442_v62 }
  0xfd   : > { %v2481_v34 = vmax.f32 %v339_v23, 0.0  ;;  %v514_v41 = vmul.f32 %v2474_v29, %v2474_v29 }
  0xfe   : > { %v473_v30 = vadd.f32 %v472_v27, %v2470_v26  ;;  %v512_v31 = vmul.f32 %v2470_v26, %v2470_v26  ;;  %v542_v32 = vadd.f32 %v541_v25, %v511_v22  ;;  %v2479_v33 = vmax.f32 %v331_v28, 0.0 }
  0xff   : > { %v515_v46 = vmul.f32 %v2481_v34, %v2481_v34 }
 0x100   : > { %v543_v35 = vadd.f32 %v542_v32, %v512_v31  ;;  %v474_v36 = vadd.f32 %v473_v30, %v2479_v33  ;;  %v513_v37 = vmul.f32 %v2479_v33, %v2479_v33  ;;  %v1963_v38 = vpop.f32.mrb[8].mxu0 }
 0x101   : > { %v352_v39 = vadd.f32 %v1963_v38, %v2442_v62  ;;  %v343_v40 = vpop.f32.mrb[9].mxu0 }
 0x102   : > { %v475_v42 = vadd.f32 %v474_v36, %v2474_v29  ;;  %v544_v43 = vadd.f32 %v543_v35, %v513_v37  ;;  %v344_v44 = vadd.f32 %v343_v40, %v2442_v62  ;;  %v1964_v45 = vpop.f32.mrb[10].mxu0 }
 0x103   : > { %v355_v47 = vadd.f32 %v1964_v45, %v2442_v62  ;;  %v346_v48 = vpop.f32.mrb[11].mxu0  ;;  %v2498_v53 = vmax.f32 %v352_v39, 0.0 }
 0x104   : > { %v545_v49 = vadd.f32 %v544_v43, %v514_v41  ;;  %v2494_v50 = vmax.f32 %v344_v44, 0.0  ;;  %v476_v51 = vadd.f32 %v475_v42, %v2481_v34  ;;  %v347_v52 = vadd.f32 %v346_v48, %v2442_v62 }
 0x105   : > { %v2505_v58 = vmax.f32 %v355_v47, 0.0  ;;  %v518_v4 = vmul.f32 %v2498_v53, %v2498_v53 }
 0x106   : > { %v477_v54 = vadd.f32 %v476_v51, %v2494_v50  ;;  %v516_v55 = vmul.f32 %v2494_v50, %v2494_v50  ;;  %v546_v56 = vadd.f32 %v545_v49, %v515_v46  ;;  %v2503_v57 = vmax.f32 %v347_v52, 0.0 }
 0x107   : > { %v519_v13 = vmul.f32 %v2505_v58, %v2505_v58 }
 0x108   : > { %v547_v60 = vadd.f32 %v546_v56, %v516_v55  ;;  %v478_v63 = vadd.f32 %v477_v54, %v2503_v57  ;;  %v517_v0 = vmul.f32 %v2503_v57, %v2503_v57  ;;  %v1967_v1 = vpop.f32.mrb[12].mxu0 }
 0x109   : > { %v368_v2 = vadd.f32 %v1967_v1, %v2442_v62  ;;  %v359_v3 = vpop.f32.mrb[13].mxu0 }
 0x10a   : > { %v479_v5 = vadd.f32 %v478_v63, %v2498_v53  ;;  %v548_v7 = vadd.f32 %v547_v60, %v517_v0  ;;  %v360_v11 = vadd.f32 %v359_v3, %v2442_v62  ;;  %v1968_v12 = vpop.f32.mrb[14].mxu0 }
 0x10b   : > { %v371_v14 = vadd.f32 %v1968_v12, %v2442_v62  ;;  %v362_v15 = vpop.f32.mrb[15].mxu0  ;;  %v2522_v20 = vmax.f32 %v368_v2, 0.0 }
 0x10c   : > { %v549_v16 = vadd.f32 %v548_v7, %v518_v4  ;;  %v2518_v17 = vmax.f32 %v360_v11, 0.0  ;;  %v480_v18 = vadd.f32 %v479_v5, %v2505_v58  ;;  %v363_v19 = vadd.f32 %v362_v15, %v2442_v62 }
 0x10d   : > { %v2529_v25 = vmax.f32 %v371_v14, 0.0  ;;  %v522_v36 = vmul.f32 %v2522_v20, %v2522_v20 }
 0x10e   : > { %v481_v21 = vadd.f32 %v480_v18, %v2518_v17  ;;  %v520_v22 = vmul.f32 %v2518_v17, %v2518_v17  ;;  %v550_v23 = vadd.f32 %v549_v16, %v519_v13  ;;  %v2527_v24 = vmax.f32 %v363_v19, 0.0 }
 0x10f   : > { %v523_v41 = vmul.f32 %v2529_v25, %v2529_v25 }
 0x110   : > { %v551_v27 = vadd.f32 %v550_v23, %v520_v22  ;;  %v482_v28 = vadd.f32 %v481_v21, %v2527_v24  ;;  %v521_v30 = vmul.f32 %v2527_v24, %v2527_v24  ;;  %v1971_v31 = vpop.f32.mrb[16].mxu0 }
 0x111   : > { %v384_v32 = vadd.f32 %v1971_v31, %v2442_v62  ;;  %v375_v35 = vpop.f32.mrb[17].mxu0 }
 0x112   : > { %v483_v37 = vadd.f32 %v482_v28, %v2522_v20  ;;  %v552_v38 = vadd.f32 %v551_v27, %v521_v30  ;;  %v376_v39 = vadd.f32 %v375_v35, %v2442_v62  ;;  %v1972_v40 = vpop.f32.mrb[18].mxu0 }
 0x113   : > { %v387_v42 = vadd.f32 %v1972_v40, %v2442_v62  ;;  %v378_v43 = vpop.f32.mrb[19].mxu0  ;;  %v2546_v48 = vmax.f32 %v384_v32, 0.0 }
 0x114   : > { %v553_v44 = vadd.f32 %v552_v38, %v522_v36  ;;  %v2542_v45 = vmax.f32 %v376_v39, 0.0  ;;  %v484_v46 = vadd.f32 %v483_v37, %v2529_v25  ;;  %v379_v47 = vadd.f32 %v378_v43, %v2442_v62 }
 0x115   : > { %v2553_v55 = vmax.f32 %v387_v42, 0.0  ;;  %v526_v3 = vmul.f32 %v2546_v48, %v2546_v48 }
 0x116   : > { %v485_v49 = vadd.f32 %v484_v46, %v2542_v45  ;;  %v524_v51 = vmul.f32 %v2542_v45, %v2542_v45  ;;  %v554_v52 = vadd.f32 %v553_v44, %v523_v41  ;;  %v2551_v54 = vmax.f32 %v379_v47, 0.0 }
 0x117   : > { %v527_v12 = vmul.f32 %v2553_v55, %v2553_v55 }
 0x118   : > { %v555_v56 = vadd.f32 %v554_v52, %v524_v51  ;;  %v486_v60 = vadd.f32 %v485_v49, %v2551_v54  ;;  %v525_v63 = vmul.f32 %v2551_v54, %v2551_v54  ;;  %v1975_v0 = vpop.f32.mrb[20].mxu0 }
 0x119   : > { %v400_v1 = vadd.f32 %v1975_v0, %v2442_v62  ;;  %v391_v2 = vpop.f32.mrb[21].mxu0 }
 0x11a   : > { %v487_v4 = vadd.f32 %v486_v60, %v2546_v48  ;;  %v556_v5 = vadd.f32 %v555_v56, %v525_v63  ;;  %v392_v7 = vadd.f32 %v391_v2, %v2442_v62  ;;  %v1976_v11 = vpop.f32.mrb[22].mxu0 }
 0x11b   : > { %v403_v13 = vadd.f32 %v1976_v11, %v2442_v62  ;;  %v394_v14 = vpop.f32.mrb[23].mxu0  ;;  %v2570_v21 = vmax.f32 %v400_v1, 0.0 }
 0x11c   : > { %v557_v15 = vadd.f32 %v556_v5, %v526_v3  ;;  %v2566_v16 = vmax.f32 %v392_v7, 0.0  ;;  %v488_v18 = vadd.f32 %v487_v4, %v2553_v55  ;;  %v395_v19 = vadd.f32 %v394_v14, %v2442_v62 }
 0x11d   : > { %v2577_v30 = vmax.f32 %v403_v13, 0.0  ;;  %v530_v39 = vmul.f32 %v2570_v21, %v2570_v21 }
 0x11e   : > { %v489_v22 = vadd.f32 %v488_v18, %v2566_v16  ;;  %v528_v23 = vmul.f32 %v2566_v16, %v2566_v16  ;;  %v558_v27 = vadd.f32 %v557_v15, %v527_v12  ;;  %v2575_v28 = vmax.f32 %v395_v19, 0.0 }
 0x11f   : > { %v531_v44 = vmul.f32 %v2577_v30, %v2577_v30 }
 0x120   : > { %v559_v31 = vadd.f32 %v558_v27, %v528_v23  ;;  %v490_v32 = vadd.f32 %v489_v22, %v2575_v28  ;;  %v529_v35 = vmul.f32 %v2575_v28, %v2575_v28  ;;  %v1979_v36 = vpop.f32.mrb[24].mxu0 }
 0x121   : > { %v416_v37 = vadd.f32 %v1979_v36, %v2442_v62  ;;  %v407_v38 = vpop.f32.mrb[25].mxu0 }
 0x122   : > { %v491_v40 = vadd.f32 %v490_v32, %v2570_v21  ;;  %v560_v41 = vadd.f32 %v559_v31, %v529_v35  ;;  %v408_v42 = vadd.f32 %v407_v38, %v2442_v62  ;;  %v1980_v43 = vpop.f32.mrb[26].mxu0 }
 0x123   : > { %v419_v46 = vadd.f32 %v1980_v43, %v2442_v62  ;;  %v410_v47 = vpop.f32.mrb[27].mxu0  ;;  %v2594_v60 = vmax.f32 %v416_v37, 0.0 }
 0x124   : > { %v561_v49 = vadd.f32 %v560_v41, %v530_v39  ;;  %v2590_v51 = vmax.f32 %v408_v42, 0.0  ;;  %v492_v52 = vadd.f32 %v491_v40, %v2577_v30  ;;  %v411_v56 = vadd.f32 %v410_v47, %v2442_v62 }
 0x125   : > { %v2601_v3 = vmax.f32 %v419_v46, 0.0  ;;  %v534_v14 = vmul.f32 %v2594_v60, %v2594_v60 }
 0x126   : > { %v493_v63 = vadd.f32 %v492_v52, %v2590_v51  ;;  %v532_v0 = vmul.f32 %v2590_v51, %v2590_v51  ;;  %v562_v1 = vadd.f32 %v561_v49, %v531_v44  ;;  %v2599_v2 = vmax.f32 %v411_v56, 0.0 }
 0x127   : > { %v535_v23 = vmul.f32 %v2601_v3, %v2601_v3 }
 0x128   : > { %v563_v4 = vadd.f32 %v562_v1, %v532_v0  ;;  %v494_v5 = vadd.f32 %v493_v63, %v2599_v2  ;;  %v533_v7 = vmul.f32 %v2599_v2, %v2599_v2  ;;  %v1983_v11 = vpop.f32.mrb[28].mxu0 }
 0x129   : > { %v432_v12 = vadd.f32 %v1983_v11, %v2442_v62  ;;  %v423_v13 = vpop.f32.mrb[29].mxu0 }
 0x12a   : > { %v495_v15 = vadd.f32 %v494_v5, %v2594_v60  ;;  %v564_v18 = vadd.f32 %v563_v4, %v533_v7  ;;  %v424_v19 = vadd.f32 %v423_v13, %v2442_v62  ;;  %v1984_v22 = vpop.f32.mrb[30].mxu0 }
 0x12b   : > { %v435_v27 = vadd.f32 %v1984_v22, %v2442_v62  ;;  %v426_v31 = vpop.f32.mrb[31].mxu0  ;;  %v2618_v38 = vmax.f32 %v432_v12, 0.0 }
 0x12c   : > { %v565_v32 = vadd.f32 %v564_v18, %v534_v14  ;;  %v2614_v35 = vmax.f32 %v424_v19, 0.0  ;;  %v496_v36 = vadd.f32 %v495_v15, %v2601_v3  ;;  %v427_v37 = vadd.f32 %v426_v31, %v2442_v62 }
 0x12d   : > { %v2623_v44 = vmax.f32 %v435_v27, 0.0  ;;  %v538_v49 = vmul.f32 %v2618_v38, %v2618_v38 }
 0x12e   : > { %v497_v39 = vadd.f32 %v496_v36, %v2614_v35  ;;  %v536_v40 = vmul.f32 %v2614_v35, %v2614_v35  ;;  %v566_v41 = vadd.f32 %v565_v32, %v535_v23  ;;  %v467_v42 = vmax.f32 %v427_v37, 0.0 }
 0x12f   : > { %v539_v56 = vmul.f32 %v2623_v44, %v2623_v44 }
 0x130   : > { %v567_v43 = vadd.f32 %v566_v41, %v536_v40  ;;  %v498_v46 = vadd.f32 %v497_v39, %v467_v42  ;;  %v537_v47 = vmul.f32 %v467_v42, %v467_v42  ;;  %v590_v39 = vsub.s32 1, %v2433_v59 }
 0x132   : > { %v499_v52 = vadd.f32 %v498_v46, %v2618_v38  ;;  %v568_v62 = vadd.f32 %v567_v43, %v537_v47  ;;  %v626_v47 = vsub.s32 2, %v2433_v59 }
 0x134   : > { %v500_v63 = vadd.f32 %v499_v52, %v2623_v44  ;;  %v569_v0 = vadd.f32 %v568_v62, %v538_v49 }
 0x136   : > { %v501_v1 = vrot.slane %v500_v63, 4  ;;  %v570_v4 = vadd.f32 %v569_v0, %v539_v56 }
 0x138   : > { %v502_v5 = vadd.f32 %v501_v1, %v500_v63  ;;  %v571_v7 = vrot.slane %v570_v4, 4 }
 0x13a   : > { %v503_v11 = vrot.slane %v502_v5, 2  ;;  %v572_v12 = vadd.f32 %v571_v7, %v570_v4 }
 0x13c   : > { %v504_v13 = vadd.f32 %v503_v11, %v502_v5  ;;  %v573_v14 = vrot.slane %v572_v12, 2 }
 0x13e   : > { %v505_v15 = vrot.slane %v504_v13, 1  ;;  %v574_v18 = vadd.f32 %v573_v14, %v572_v12 }
 0x140   : > { %v506_v19 = vadd.f32 %v505_v15, %v504_v13  ;;  %v575_v22 = vrot.slane %v574_v18, 1 }
 0x142   : > { %v507_v23 = vmul.f32 0.00390625, %v506_v19  ;;  %v576_v27 = vadd.f32 %v575_v22, %v574_v18 }
 0x144   : > { %v577_v31 = vmul.f32 0.00390625, %v576_v27  ;;  %v578_v32 = vmul.f32 %v507_v23, %v507_v23 }
 0x146   : > { %v579_v36 = vsub.f32 %v577_v31, %v578_v32 }
 0x148   : > { %v580_v37 = vadd.f32 1e-05, %v579_v36 }
 0x14a   : > { %2211 = vrsqrt.f32 %v580_v37 }
 0x154   : > { %v2212_v40 = vpop.eup %2211 }
 0x155   : > { %v582_v41 = vmul.f32 %v2212_v40, %v2439_v61 }
 0x157   : > { %v583_v43 = vmul.f32 %v582_v41, %v507_v23  ;;  %v591_v46 = vrot.slane %v582_v41, %v590_v39 }
 0x159   : > { %v585_v49 = vrot.slane %v583_v43, 7  ;;  %v2634_v52 = vmul.f32 %v591_v46, %v467_v42  ;;  %v594_v62 = vmul.f32 %v591_v46, %v2450_v8  ;;  %v595_v56 = vmul.f32 %v591_v46, %v2454_v10 }
 0x15a   : > { %v596_v63 = vmul.f32 %v591_v46, %v2470_v26  ;;  %v597_v0 = vmul.f32 %v591_v46, %v2479_v33  ;;  %v598_v1 = vmul.f32 %v591_v46, %v2474_v29  ;;  %v599_v4 = vmul.f32 %v591_v46, %v2481_v34 }
 0x15b   : > { %v587_v5 = vsub.f32 %v2439_v61, %v585_v49  ;;  %v600_v7 = vmul.f32 %v591_v46, %v2494_v50  ;;  %v601_v11 = vmul.f32 %v591_v46, %v2503_v57  ;;  %v602_v42 = vmul.f32 %v591_v46, %v2498_v53 }
 0x15c   : > { %v603_v8 = vmul.f32 %v591_v46, %v2505_v58  ;;  %v604_v10 = vmul.f32 %v591_v46, %v2518_v17  ;;  %v605_v26 = vmul.f32 %v591_v46, %v2527_v24  ;;  %v606_v33 = vmul.f32 %v591_v46, %v2522_v20 }
 0x15d   : > { %v2650_v12 = vrot.slane %v587_v5, %v626_v47  ;;  %v607_v29 = vmul.f32 %v591_v46, %v2529_v25  ;;  %v608_v34 = vmul.f32 %v591_v46, %v2542_v45  ;;  %v609_v50 = vmul.f32 %v591_v46, %v2551_v54 }
 0x15e   : > { %v610_v57 = vmul.f32 %v591_v46, %v2546_v48  ;;  %v611_v53 = vmul.f32 %v591_v46, %v2553_v55  ;;  %v612_v58 = vmul.f32 %v591_v46, %v2566_v16  ;;  %v613_v17 = vmul.f32 %v591_v46, %v2575_v28 }
 0x15f   : > { %v614_v24 = vmul.f32 %v591_v46, %v2570_v21  ;;  %v615_v20 = vmul.f32 %v591_v46, %v2577_v30  ;;  %v616_v13 = vmul.f32 %v591_v46, %v2590_v51  ;;  %v617_v25 = vmul.f32 %v591_v46, %v2599_v2 }
 0x160   : > { %v618_v45 = vmul.f32 %v591_v46, %v2594_v60  ;;  %v619_v54 = vmul.f32 %v591_v46, %v2601_v3  ;;  %v620_v48 = vmul.f32 %v591_v46, %v2614_v35  ;;  %v622_v55 = vmul.f32 %v591_v46, %v2618_v38 }
 0x161   : > { %v623_v16 = vmul.f32 %v591_v46, %v2623_v44  ;;  %v592_v28 = vmul.f32 %v591_v46, %v2447_v6  ;;  %v593_v21 = vmul.f32 %v591_v46, %v2452_v9  ;;  %v630_v30 = vadd.f32 %v2650_v12, %v594_v62 }
 0x162   : > { %v631_v51 = vadd.f32 %v2650_v12, %v595_v56  ;;  %v632_v2 = vadd.f32 %v2650_v12, %v596_v63  ;;  %v633_v60 = vadd.f32 %v2650_v12, %v597_v0  ;;  %v634_v3 = vadd.f32 %v2650_v12, %v598_v1 }
 0x163   : > { %v628_v35 = vadd.f32 %v2650_v12, %v592_v28  ;;  %v629_v38 = vadd.f32 %v2650_v12, %v593_v21  ;;  %v635_v44 = vadd.f32 %v2650_v12, %v599_v4  ;;  %v636_v6 = vadd.f32 %v2650_v12, %v600_v7 }
 0x164   : > { %v661_v14 = vpack.c.bf16 %v631_v51, %v630_v30  ;;  %v662_v9 = vpack.c.bf16 %v633_v60, %v632_v2  ;;  %v637_v15 = vadd.f32 %v2650_v12, %v601_v11  ;;  %v638_v18 = vadd.f32 %v2650_v12, %v602_v42 }
 0x165   : > { %v660_v19 = vpack.c.bf16 %v629_v38, %v628_v35  ;;  %v663_v22 = vpack.c.bf16 %v635_v44, %v634_v3  ;;  %v639_v23 = vadd.f32 %v2650_v12, %v603_v8  ;;  %v640_v27 = vadd.f32 %v2650_v12, %v604_v10 }
 0x166   : > { %v664_v31 = vpack.c.bf16 %v637_v15, %v636_v6  ;;  %v641_v32 = vadd.f32 %v2650_v12, %v605_v26  ;;  %v642_v36 = vadd.f32 %v2650_v12, %v606_v33  ;;  %v643_v37 = vadd.f32 %v2650_v12, %v607_v29 }
 0x167   : > { %2001 = vmatprep.mubr.bf16.mxu1 %v660_v19  ;;  %v665_v39 = vpack.c.bf16 %v639_v23, %v638_v18  ;;  %v644_v40 = vadd.f32 %v2650_v12, %v608_v34  ;;  %v645_v41 = vadd.f32 %v2650_v12, %v609_v50  ;;  %v646_v43 = vadd.f32 %v2650_v12, %v610_v57 }
 0x168   : > { %2002 = vmatmul.mubr.bf16.vlgmr.msra.gmra.mrb[0].mxu1 %v661_v14  ;;  %v666_v46 = vpack.c.bf16 %v641_v32, %v640_v27  ;;  %v667_v47 = vpack.c.bf16 %v643_v37, %v642_v36  ;;  %v647_v49 = vadd.f32 %v2650_v12, %v611_v53  ;;  %v648_v62 = vadd.f32 %v2650_v12, %v612_v58 }
 0x169   : > { %2005 = vmatprep.mubr.bf16.mxu1 %v662_v9  ;;  %v668_v56 = vpack.c.bf16 %v645_v41, %v644_v40  ;;  %v649_v63 = vadd.f32 %v2650_v12, %v613_v17  ;;  %v650_v0 = vadd.f32 %v2650_v12, %v614_v24  ;;  %v651_v1 = vadd.f32 %v2650_v12, %v615_v20  ;;  %v2197_v17 = vld [vmem:[%s3217_s1 + $0x90] sm:$0xff]   ;;  %v2198_v24 = vld [vmem:[%s3217_s1 + $0x98] sm:$0xff]   ;;  %v2199_v20 = vld [vmem:[%s3217_s1 + $0xa0] sm:$0xff]  }
 0x16a   : > { %v669_v4 = vpack.c.bf16 %v647_v49, %v646_v43  ;;  %v652_v5 = vadd.f32 %v2650_v12, %v616_v13  ;;  %v653_v7 = vadd.f32 %v2650_v12, %v617_v25  ;;  %v654_v11 = vadd.f32 %v2650_v12, %v618_v45  ;;  %v2200_v13 = vld [vmem:[%s3217_s1 + $0xa8] sm:$0xff]   ;;  %v2201_v25 = vld [vmem:[%s3217_s1 + $0xb0] sm:$0xff]   ;;  %v2202_v45 = vld [vmem:[%s3217_s1 + $0xb8] sm:$0xff]  }
 0x16b   : > { %v670_v42 = vpack.c.bf16 %v649_v63, %v648_v62  ;;  %v671_v8 = vpack.c.bf16 %v651_v1, %v650_v0  ;;  %v655_v10 = vadd.f32 %v2650_v12, %v619_v54  ;;  %v656_v26 = vadd.f32 %v2650_v12, %v620_v48 }
 0x16c   : > { %v672_v33 = vpack.c.bf16 %v653_v7, %v652_v5  ;;  %v657_v29 = vadd.f32 %v2650_v12, %v2634_v52  ;;  %v658_v34 = vadd.f32 %v2650_v12, %v622_v55  ;;  %v659_v50 = vadd.f32 %v2650_v12, %v623_v16  ;;  %v2195_v52 = vld [vmem:[%s3217_s1 + $0x80] sm:$0xff]   ;;  %v2196_v12 = vld [vmem:[%s3217_s1 + $0x88] sm:$0xff]  }
 0x16d   : > { %v673_v57 = vpack.c.bf16 %v655_v10, %v654_v11  ;;  %2033 = vmatprep.subr.bf16.mxu0 %v2195_v52  ;;  %v695_v54 = vsub.s32 3, %v2433_v59 }
 0x16e   : > { %v674_v53 = vpack.c.bf16 %v657_v29, %v656_v26  ;;  %v675_v58 = vpack.c.bf16 %v659_v50, %v658_v34  ;;  %2034 = vmatpush3.bf16.msra.mxu0 %v2195_v52 }
 0x16f   : > { %2035 = vmatprep.subr.bf16.mxu0 %v2196_v12  ;;  %v2729_v48 = vrot.slane %v2439_v61, %v695_v54 }
 0x170   : > { %2006 = vmatmul.mubr.bf16.gmra.mrb[4].mxu1 %v663_v22 }
 0x171   : > { %2009 = vmatprep.mubr.bf16.mxu1 %v664_v31 }
 0x172   : > { %2036 = vmatpush3.bf16.msra.mxu0 %v2196_v12 }
 0x173   : > { %2037 = vmatprep.subr.bf16.mxu0 %v2197_v17 }
 0x176   : > { %2038 = vmatpush3.bf16.msra.mxu0 %v2197_v17 }
 0x177   : > { %2039 = vmatprep.subr.bf16.mxu0 %v2198_v24 }
 0x178   : > { %2010 = vmatmul.mubr.bf16.gmra.mrb[8].mxu1 %v665_v39 }
 0x179   : > { %2013 = vmatprep.mubr.bf16.mxu1 %v666_v46 }
 0x17a   : > { %2040 = vmatpush3.bf16.msra.mxu0 %v2198_v24 }
 0x17b   : > { %2041 = vmatprep.subr.bf16.mxu0 %v2199_v20 }
 0x17e   : > { %2042 = vmatpush3.bf16.msra.mxu0 %v2199_v20 }
 0x17f   : > { %2043 = vmatprep.subr.bf16.mxu0 %v2200_v13 }
 0x180   : > { %2014 = vmatmul.mubr.bf16.gmra.mrb[12].mxu1 %v667_v47 }
 0x181   : > { %2017 = vmatprep.mubr.bf16.mxu1 %v668_v56 }
 0x182   : > { %2044 = vmatpush3.bf16.msra.mxu0 %v2200_v13 }
 0x183   : > { %2045 = vmatprep.subr.bf16.mxu0 %v2201_v25 }
 0x186   : > { %2046 = vmatpush3.bf16.msra.mxu0 %v2201_v25 }
 0x187   : > { %2047 = vmatprep.subr.bf16.mxu0 %v2202_v45 }
 0x188   : > { %2018 = vmatmul.mubr.bf16.gmra.mrb[16].mxu1 %v669_v4 }
 0x189   : > { %2021 = vmatprep.mubr.bf16.mxu1 %v670_v42 }
 0x18a   : > { %2048 = vmatpush3.bf16.msra.mxu0 %v2202_v45 }
 0x190   : > { %2022 = vmatmul.mubr.bf16.gmra.mrb[20].mxu1 %v671_v8 }
 0x191   : > { %2025 = vmatprep.mubr.bf16.mxu1 %v672_v33 }
 0x198   : > { %2026 = vmatmul.mubr.bf16.gmra.mrb[24].mxu1 %v673_v57 }
 0x199   : > { %2029 = vmatprep.mubr.bf16.mxu1 %v674_v53 }
 0x1a0   : > { %2030 = vmatmul.mubr.bf16.gmra.mrb[28].mxu1 %v675_v58 }
 0x23b   : > { %v2003_v55 = vpop.f32.mrb[0].mxu1 }
 0x23c   : > { %v779_v16 = vpop.f32.mrb[1].mxu1  ;;  %v788_v28 = vadd.f32 %v2003_v55, %v2729_v48 }
 0x23d   : > { %v780_v21 = vadd.f32 %v779_v16, %v2729_v48  ;;  %v2004_v30 = vpop.f32.mrb[2].mxu1 }
 0x23e   : > { %v791_v51 = vadd.f32 %v2004_v30, %v2729_v48  ;;  %v782_v2 = vpop.f32.mrb[3].mxu1  ;;  %v2737_v35 = vmax.f32 %v788_v28, 0.0 }
 0x23f   : > { %v2734_v60 = vmax.f32 %v780_v21, 0.0  ;;  %v783_v3 = vadd.f32 %v782_v2, %v2729_v48 }
 0x240   : > { %v2741_v61 = vmax.f32 %v791_v51, 0.0  ;;  %v978_v19 = vmul.f32 %v2737_v35, %v2737_v35 }
 0x241   : > { %v2739_v38 = vmax.f32 %v783_v3, 0.0  ;;  %v976_v44 = vmul.f32 %v2734_v60, %v2734_v60 }
 0x242   : > { %v979_v32 = vmul.f32 %v2741_v61, %v2741_v61 }
 0x243   : > { %v938_v6 = vadd.f32 %v2739_v38, %v2734_v60  ;;  %v977_v14 = vmul.f32 %v2739_v38, %v2739_v38  ;;  %v2007_v9 = vpop.f32.mrb[4].mxu1 }
 0x244   : > { %v804_v15 = vadd.f32 %v2007_v9, %v2729_v48  ;;  %v795_v18 = vpop.f32.mrb[5].mxu1 }
 0x245   : > { %v939_v22 = vadd.f32 %v938_v6, %v2737_v35  ;;  %v1008_v23 = vadd.f32 %v977_v14, %v976_v44  ;;  %v796_v27 = vadd.f32 %v795_v18, %v2729_v48  ;;  %v2008_v31 = vpop.f32.mrb[6].mxu1 }
 0x246   : > { %v807_v36 = vadd.f32 %v2008_v31, %v2729_v48  ;;  %v798_v37 = vpop.f32.mrb[7].mxu1  ;;  %v2761_v46 = vmax.f32 %v804_v15, 0.0 }
 0x247   : > { %v1009_v39 = vadd.f32 %v1008_v23, %v978_v19  ;;  %v2757_v40 = vmax.f32 %v796_v27, 0.0  ;;  %v940_v41 = vadd.f32 %v939_v22, %v2741_v61  ;;  %v799_v43 = vadd.f32 %v798_v37, %v2729_v48 }
 0x248   : > { %v2768_v63 = vmax.f32 %v807_v36, 0.0  ;;  %v982_v42 = vmul.f32 %v2761_v46, %v2761_v46 }
 0x249   : > { %v941_v47 = vadd.f32 %v940_v41, %v2757_v40  ;;  %v980_v49 = vmul.f32 %v2757_v40, %v2757_v40  ;;  %v1010_v62 = vadd.f32 %v1009_v39, %v979_v32  ;;  %v2766_v56 = vmax.f32 %v799_v43, 0.0 }
 0x24a   : > { %v983_v29 = vmul.f32 %v2768_v63, %v2768_v63 }
 0x24b   : > { %v1011_v0 = vadd.f32 %v1010_v62, %v980_v49  ;;  %v942_v1 = vadd.f32 %v941_v47, %v2766_v56  ;;  %v981_v4 = vmul.f32 %v2766_v56, %v2766_v56  ;;  %v2011_v5 = vpop.f32.mrb[8].mxu1 }
 0x24c   : > { %v820_v7 = vadd.f32 %v2011_v5, %v2729_v48  ;;  %v811_v11 = vpop.f32.mrb[9].mxu1 }
 0x24d   : > { %v943_v8 = vadd.f32 %v942_v1, %v2761_v46  ;;  %v1012_v10 = vadd.f32 %v1011_v0, %v981_v4  ;;  %v812_v26 = vadd.f32 %v811_v11, %v2729_v48  ;;  %v2012_v33 = vpop.f32.mrb[10].mxu1 }
 0x24e   : > { %v823_v34 = vadd.f32 %v2012_v33, %v2729_v48  ;;  %v814_v50 = vpop.f32.mrb[11].mxu1  ;;  %v2785_v12 = vmax.f32 %v820_v7, 0.0 }
 0x24f   : > { %v1013_v57 = vadd.f32 %v1012_v10, %v982_v42  ;;  %v2781_v53 = vmax.f32 %v812_v26, 0.0  ;;  %v944_v58 = vadd.f32 %v943_v8, %v2768_v63  ;;  %v815_v52 = vadd.f32 %v814_v50, %v2729_v48 }
 0x250   : > { %v2792_v25 = vmax.f32 %v823_v34, 0.0  ;;  %v986_v30 = vmul.f32 %v2785_v12, %v2785_v12 }
 0x251   : > { %v945_v17 = vadd.f32 %v944_v58, %v2781_v53  ;;  %v984_v24 = vmul.f32 %v2781_v53, %v2781_v53  ;;  %v1014_v20 = vadd.f32 %v1013_v57, %v983_v29  ;;  %v2790_v13 = vmax.f32 %v815_v52, 0.0 }
 0x252   : > { %v987_v6 = vmul.f32 %v2792_v25, %v2792_v25 }
 0x253   : > { %v1015_v45 = vadd.f32 %v1014_v20, %v984_v24  ;;  %v946_v54 = vadd.f32 %v945_v17, %v2790_v13  ;;  %v985_v55 = vmul.f32 %v2790_v13, %v2790_v13  ;;  %v2015_v16 = vpop.f32.mrb[12].mxu1 }
 0x254   : > { %v836_v28 = vadd.f32 %v2015_v16, %v2729_v48  ;;  %v827_v21 = vpop.f32.mrb[13].mxu1 }
 0x255   : > { %v947_v51 = vadd.f32 %v946_v54, %v2785_v12  ;;  %v1016_v2 = vadd.f32 %v1015_v45, %v985_v55  ;;  %v828_v3 = vadd.f32 %v827_v21, %v2729_v48  ;;  %v2016_v44 = vpop.f32.mrb[14].mxu1 }
 0x256   : > { %v839_v14 = vadd.f32 %v2016_v44, %v2729_v48  ;;  %v830_v9 = vpop.f32.mrb[15].mxu1  ;;  %v2809_v23 = vmax.f32 %v836_v28, 0.0 }
 0x257   : > { %v1017_v15 = vadd.f32 %v1016_v2, %v986_v30  ;;  %v2805_v18 = vmax.f32 %v828_v3, 0.0  ;;  %v948_v19 = vadd.f32 %v947_v51, %v2792_v25  ;;  %v831_v22 = vadd.f32 %v830_v9, %v2729_v48 }
 0x258   : > { %v2816_v37 = vmax.f32 %v839_v14, 0.0  ;;  %v990_v0 = vmul.f32 %v2809_v23, %v2809_v23 }
 0x259   : > { %v949_v27 = vadd.f32 %v948_v19, %v2805_v18  ;;  %v988_v31 = vmul.f32 %v2805_v18, %v2805_v18  ;;  %v1018_v32 = vadd.f32 %v1017_v15, %v987_v6  ;;  %v2814_v36 = vmax.f32 %v831_v22, 0.0 }
 0x25a   : > { %v991_v11 = vmul.f32 %v2816_v37, %v2816_v37 }
 0x25b   : > { %v1019_v39 = vadd.f32 %v1018_v32, %v988_v31  ;;  %v950_v41 = vadd.f32 %v949_v27, %v2814_v36  ;;  %v989_v43 = vmul.f32 %v2814_v36, %v2814_v36  ;;  %v2019_v47 = vpop.f32.mrb[16].mxu1 }
 0x25c   : > { %v852_v49 = vadd.f32 %v2019_v47, %v2729_v48  ;;  %v843_v62 = vpop.f32.mrb[17].mxu1 }
 0x25d   : > { %v951_v1 = vadd.f32 %v950_v41, %v2809_v23  ;;  %v1020_v4 = vadd.f32 %v1019_v39, %v989_v43  ;;  %v844_v5 = vadd.f32 %v843_v62, %v2729_v48  ;;  %v2020_v7 = vpop.f32.mrb[18].mxu1  ;;  %v2869_v43 = vld [vmem:[%s3217_s1 + $0xc0] sm:$0xff]  }
 0x25e   : > { %v855_v42 = vadd.f32 %v2020_v7, %v2729_v48  ;;  %v846_v8 = vpop.f32.mrb[19].mxu1  ;;  %v2833_v34 = vmax.f32 %v852_v49, 0.0  ;;  %2129 = vmatprep.subr.bf16.mxu1 %v2869_v43  ;;  %2081 = vmatprep.subr.bf16.mxu0 %v2869_v43 }
 0x25f   : > { %v1021_v10 = vadd.f32 %v1020_v4, %v990_v0  ;;  %v2829_v26 = vmax.f32 %v844_v5, 0.0  ;;  %v952_v33 = vadd.f32 %v951_v1, %v2816_v37  ;;  %v847_v29 = vadd.f32 %v846_v8, %v2729_v48  ;;  %v2879_v5 = vld [vmem:[%s3217_s1 + $0xc8] sm:$0xff]   ;;  %2137 = vmatpush3.bf16.msra.mxu1 %v2869_v43 }
 0x260   : > { %v2840_v17 = vmax.f32 %v855_v42, 0.0  ;;  %v994_v28 = vmul.f32 %v2833_v34, %v2833_v34  ;;  %2130 = vmatprep.subr.bf16.mxu1 %v2879_v5 }
 0x261   : > { %v953_v50 = vadd.f32 %v952_v33, %v2829_v26  ;;  %v992_v57 = vmul.f32 %v2829_v26, %v2829_v26  ;;  %v1022_v58 = vadd.f32 %v1021_v10, %v991_v11  ;;  %v2838_v52 = vmax.f32 %v847_v29, 0.0 }
 0x262   : > { %v995_v3 = vmul.f32 %v2840_v17, %v2840_v17 }
 0x263   : > { %v1023_v24 = vadd.f32 %v1022_v58, %v992_v57  ;;  %v954_v20 = vadd.f32 %v953_v50, %v2838_v52  ;;  %v993_v45 = vmul.f32 %v2838_v52, %v2838_v52  ;;  %v2023_v54 = vpop.f32.mrb[20].mxu1  ;;  %2138 = vmatpush3.bf16.msra.mxu1 %v2879_v5 }
 0x264   : > { %v868_v55 = vadd.f32 %v2023_v54, %v2729_v48  ;;  %v859_v16 = vpop.f32.mrb[21].mxu1  ;;  %v2900_v54 = vld [vmem:[%s3217_s1 + $0xd0] sm:$0xff]  }
 0x265   : > { %v955_v21 = vadd.f32 %v954_v20, %v2833_v34  ;;  %v1024_v30 = vadd.f32 %v1023_v24, %v993_v45  ;;  %v860_v51 = vadd.f32 %v859_v16, %v2729_v48  ;;  %v2024_v2 = vpop.f32.mrb[22].mxu1  ;;  %2131 = vmatprep.subr.bf16.mxu1 %v2900_v54 }
 0x266   : > { %v871_v44 = vadd.f32 %v2024_v2, %v2729_v48  ;;  %v862_v6 = vpop.f32.mrb[23].mxu1  ;;  %v2857_v22 = vmax.f32 %v868_v55, 0.0 }
 0x267   : > { %v1025_v14 = vadd.f32 %v1024_v30, %v994_v28  ;;  %v2853_v9 = vmax.f32 %v860_v51, 0.0  ;;  %v956_v15 = vadd.f32 %v955_v21, %v2840_v17  ;;  %v863_v19 = vadd.f32 %v862_v6, %v2729_v48  ;;  %2139 = vmatpush3.bf16.msra.mxu1 %v2900_v54 }
 0x268   : > { %v2864_v41 = vmax.f32 %v871_v44, 0.0  ;;  %v998_v7 = vmul.f32 %v2857_v22, %v2857_v22 }
 0x269   : > { %v957_v27 = vadd.f32 %v956_v15, %v2853_v9  ;;  %v996_v31 = vmul.f32 %v2853_v9, %v2853_v9  ;;  %v1026_v32 = vadd.f32 %v1025_v14, %v995_v3  ;;  %v2862_v39 = vmax.f32 %v863_v19, 0.0  ;;  %v2918_v15 = vld [vmem:[%s3217_s1 + $0xd8] sm:$0xff]  }
 0x26a   : > { %v999_v33 = vmul.f32 %v2864_v41, %v2864_v41  ;;  %2132 = vmatprep.subr.bf16.mxu1 %v2918_v15 }
 0x26b   : > { %v1027_v47 = vadd.f32 %v1026_v32, %v996_v31  ;;  %v958_v49 = vadd.f32 %v957_v27, %v2862_v39  ;;  %v997_v62 = vmul.f32 %v2862_v39, %v2862_v39  ;;  %v2027_v0 = vpop.f32.mrb[24].mxu1  ;;  %2140 = vmatpush3.bf16.msra.mxu1 %v2918_v15 }
 0x26c   : > { %v884_v1 = vadd.f32 %v2027_v0, %v2729_v48  ;;  %v875_v4 = vpop.f32.mrb[25].mxu1 }
 0x26d   : > { %v959_v11 = vadd.f32 %v958_v49, %v2857_v22  ;;  %v1028_v42 = vadd.f32 %v1027_v47, %v997_v62  ;;  %v876_v8 = vadd.f32 %v875_v4, %v2729_v48  ;;  %v2028_v10 = vpop.f32.mrb[26].mxu1 }
 0x26e   : > { %v887_v29 = vadd.f32 %v2028_v10, %v2729_v48  ;;  %v878_v50 = vpop.f32.mrb[27].mxu1  ;;  %v2895_v45 = vmax.f32 %v884_v1, 0.0 }
 0x26f   : > { %v1029_v57 = vadd.f32 %v1028_v42, %v998_v7  ;;  %v2891_v58 = vmax.f32 %v876_v8, 0.0  ;;  %v960_v24 = vadd.f32 %v959_v11, %v2864_v41  ;;  %v879_v20 = vadd.f32 %v878_v50, %v2729_v48  ;;  %v2938_v8 = vld [vmem:[%s3217_s1 + $0xe0] sm:$0xff]  }
 0x270   : > { %v2908_v30 = vmax.f32 %v887_v29, 0.0  ;;  %v1002_v19 = vmul.f32 %v2895_v45, %v2895_v45  ;;  %2133 = vmatprep.subr.bf16.mxu1 %v2938_v8 }
 0x271   : > { %v961_v55 = vadd.f32 %v960_v24, %v2891_v58  ;;  %v1000_v16 = vmul.f32 %v2891_v58, %v2891_v58  ;;  %v1030_v28 = vadd.f32 %v1029_v57, %v999_v33  ;;  %v2905_v21 = vmax.f32 %v879_v20, 0.0  ;;  %2141 = vmatpush3.bf16.msra.mxu1 %v2938_v8 }
 0x272   : > { %v1003_v49 = vmul.f32 %v2908_v30, %v2908_v30 }
 0x273   : > { %v1031_v51 = vadd.f32 %v1030_v28, %v1000_v16  ;;  %v962_v2 = vadd.f32 %v961_v55, %v2905_v21  ;;  %v1001_v3 = vmul.f32 %v2905_v21, %v2905_v21  ;;  %v2031_v44 = vpop.f32.mrb[28].mxu1  ;;  %v2950_v55 = vld [vmem:[%s3217_s1 + $0xe8] sm:$0xff]  }
 0x274   : > { %v900_v6 = vadd.f32 %v2031_v44, %v2729_v48  ;;  %v891_v14 = vpop.f32.mrb[29].mxu1  ;;  %2134 = vmatprep.subr.bf16.mxu1 %v2950_v55 }
 0x275   : > { %v963_v27 = vadd.f32 %v962_v2, %v2895_v45  ;;  %v1032_v31 = vadd.f32 %v1031_v51, %v1001_v3  ;;  %v892_v32 = vadd.f32 %v891_v14, %v2729_v48  ;;  %v2032_v47 = vpop.f32.mrb[30].mxu1  ;;  %2142 = vmatpush3.bf16.msra.mxu1 %v2950_v55 }
 0x276   : > { %v903_v62 = vadd.f32 %v2032_v47, %v2729_v48  ;;  %v894_v0 = vpop.f32.mrb[31].mxu1  ;;  %v2933_v42 = vmax.f32 %v900_v6, 0.0 }
 0x277   : > { %v1033_v1 = vadd.f32 %v1032_v31, %v1002_v19  ;;  %v2929_v4 = vmax.f32 %v892_v32, 0.0  ;;  %v964_v7 = vadd.f32 %v963_v27, %v2908_v30  ;;  %v895_v11 = vadd.f32 %v894_v0, %v2729_v48 }
 0x278   : > { %v2945_v48 = vmax.f32 %v903_v62, 0.0  ;;  %v1006_v16 = vmul.f32 %v2933_v42, %v2933_v42 }
 0x279   : > { %v965_v10 = vadd.f32 %v964_v7, %v2929_v4  ;;  %v1004_v33 = vmul.f32 %v2929_v4, %v2929_v4  ;;  %v1034_v29 = vadd.f32 %v1033_v1, %v1003_v49  ;;  %v935_v50 = vmax.f32 %v895_v11, 0.0 }
 0x27a   : > { %v1007_v2 = vmul.f32 %v2945_v48, %v2945_v48 }
 0x27b   : > { %v1035_v57 = vadd.f32 %v1034_v29, %v1004_v33  ;;  %v966_v24 = vadd.f32 %v965_v10, %v935_v50  ;;  %v1005_v20 = vmul.f32 %v935_v50, %v935_v50 }
 0x27d   : > { %v967_v28 = vadd.f32 %v966_v24, %v2933_v42  ;;  %v1036_v51 = vadd.f32 %v1035_v57, %v1005_v20  ;;  %v1058_v20 = vsub.s32 4, %v2433_v59 }
 0x27f   : > { %v968_v3 = vadd.f32 %v967_v28, %v2945_v48  ;;  %v1037_v44 = vadd.f32 %v1036_v51, %v1006_v16  ;;  %v2965_v28 = vld [vmem:[%s3218_s2] sm:$0xff] }
 0x281   : > { %v969_v6 = vrot.slane %v968_v3, 4  ;;  %v1038_v14 = vadd.f32 %v1037_v44, %v1007_v2  ;;  %v1094_v44 = vsub.s32 5, %v2433_v59 }
 0x283   : > { %v970_v19 = vadd.f32 %v969_v6, %v968_v3  ;;  %v1039_v27 = vrot.slane %v1038_v14, 4 }
 0x285   : > { %v971_v31 = vrot.slane %v970_v19, 2  ;;  %v1040_v32 = vadd.f32 %v1039_v27, %v1038_v14 }
 0x287   : > { %v972_v47 = vadd.f32 %v971_v31, %v970_v19  ;;  %v1041_v49 = vrot.slane %v1040_v32, 2 }
 0x289   : > { %v973_v62 = vrot.slane %v972_v47, 1  ;;  %v1042_v0 = vadd.f32 %v1041_v49, %v1040_v32 }
 0x28b   : > { %v974_v1 = vadd.f32 %v973_v62, %v972_v47  ;;  %v1043_v7 = vrot.slane %v1042_v0, 1 }
 0x28d   : > { %v975_v11 = vmul.f32 0.00390625, %v974_v1  ;;  %v1044_v10 = vadd.f32 %v1043_v7, %v1042_v0 }
 0x28f   : > { %v1045_v33 = vmul.f32 0.00390625, %v1044_v10  ;;  %v1046_v29 = vmul.f32 %v975_v11, %v975_v11 }
 0x291   : > { %v1047_v57 = vsub.f32 %v1045_v33, %v1046_v29 }
 0x293   : > { %v1048_v24 = vadd.f32 1e-05, %v1047_v57 }
 0x295   : > { %2213 = vrsqrt.f32 %v1048_v24 }
 0x29f   : > { %v2214_v16 = vpop.eup %2213 }
 0x2a0   : > { %v1050_v51 = vmul.f32 %v2965_v28, %v2214_v16 }
 0x2a2   : > { %v1051_v2 = vmul.f32 %v1050_v51, %v975_v11  ;;  %v1059_v3 = vrot.slane %v1050_v51, %v1058_v20 }
 0x2a4   : > { %v1053_v6 = vrot.slane %v1051_v2, 7  ;;  %v2969_v14 = vmul.f32 %v1059_v3, %v935_v50  ;;  %v1060_v19 = vmul.f32 %v1059_v3, %v2734_v60  ;;  %v1061_v27 = vmul.f32 %v1059_v3, %v2739_v38 }
 0x2a5   : > { %v1062_v31 = vmul.f32 %v1059_v3, %v2737_v35  ;;  %v1063_v32 = vmul.f32 %v1059_v3, %v2741_v61  ;;  %v1064_v47 = vmul.f32 %v1059_v3, %v2757_v40  ;;  %v1065_v49 = vmul.f32 %v1059_v3, %v2766_v56 }
 0x2a6   : > { %v1055_v62 = vsub.f32 %v2965_v28, %v1053_v6  ;;  %v1066_v0 = vmul.f32 %v1059_v3, %v2761_v46  ;;  %v1067_v1 = vmul.f32 %v1059_v3, %v2768_v63  ;;  %v1068_v50 = vmul.f32 %v1059_v3, %v2781_v53 }
 0x2a7   : > { %v1069_v60 = vmul.f32 %v1059_v3, %v2790_v13  ;;  %v1070_v38 = vmul.f32 %v1059_v3, %v2785_v12  ;;  %v1071_v35 = vmul.f32 %v1059_v3, %v2792_v25  ;;  %v1072_v61 = vmul.f32 %v1059_v3, %v2805_v18 }
 0x2a8   : > { %v2985_v7 = vrot.slane %v1055_v62, %v1094_v44  ;;  %v1073_v40 = vmul.f32 %v1059_v3, %v2814_v36  ;;  %v1074_v56 = vmul.f32 %v1059_v3, %v2809_v23  ;;  %v1075_v46 = vmul.f32 %v1059_v3, %v2816_v37 }
 0x2a9   : > { %v1076_v63 = vmul.f32 %v1059_v3, %v2829_v26  ;;  %v1077_v53 = vmul.f32 %v1059_v3, %v2838_v52  ;;  %v1078_v13 = vmul.f32 %v1059_v3, %v2833_v34  ;;  %v1079_v12 = vmul.f32 %v1059_v3, %v2840_v17 }
 0x2aa   : > { %v1080_v25 = vmul.f32 %v1059_v3, %v2853_v9  ;;  %v1081_v18 = vmul.f32 %v1059_v3, %v2862_v39  ;;  %v1082_v11 = vmul.f32 %v1059_v3, %v2857_v22  ;;  %v1083_v36 = vmul.f32 %v1059_v3, %v2864_v41 }
 0x2ab   : > { %v1084_v23 = vmul.f32 %v1059_v3, %v2891_v58  ;;  %v1085_v37 = vmul.f32 %v1059_v3, %v2905_v21  ;;  %v1086_v26 = vmul.f32 %v1059_v3, %v2895_v45  ;;  %v1087_v52 = vmul.f32 %v1059_v3, %v2908_v30 }
 0x2ac   : > { %v1088_v34 = vmul.f32 %v1059_v3, %v2929_v4  ;;  %v1090_v17 = vmul.f32 %v1059_v3, %v2933_v42  ;;  %v1091_v9 = vmul.f32 %v1059_v3, %v2945_v48  ;;  %v1098_v39 = vadd.f32 %v2985_v7, %v1062_v31 }
 0x2ad   : > { %v1099_v22 = vadd.f32 %v2985_v7, %v1063_v32  ;;  %v1096_v41 = vadd.f32 %v2985_v7, %v1060_v19  ;;  %v1097_v58 = vadd.f32 %v2985_v7, %v1061_v27  ;;  %v1100_v21 = vadd.f32 %v2985_v7, %v1064_v47 }
 0x2ae   : > { %v1101_v45 = vadd.f32 %v2985_v7, %v1065_v49  ;;  %v1102_v30 = vadd.f32 %v2985_v7, %v1066_v0  ;;  %v1103_v4 = vadd.f32 %v2985_v7, %v1067_v1  ;;  %v1104_v42 = vadd.f32 %v2985_v7, %v1068_v50 }
 0x2af   : > { %v1129_v10 = vpack.c.bf16 %v1099_v22, %v1098_v39  ;;  %v1128_v48 = vpack.c.bf16 %v1097_v58, %v1096_v41  ;;  %v1105_v33 = vadd.f32 %v2985_v7, %v1069_v60  ;;  %v1106_v29 = vadd.f32 %v2985_v7, %v1070_v38 }
 0x2b0   : > { %v1130_v57 = vpack.c.bf16 %v1101_v45, %v1100_v21  ;;  %v1131_v24 = vpack.c.bf16 %v1103_v4, %v1102_v30  ;;  %v1107_v20 = vadd.f32 %v2985_v7, %v1071_v35  ;;  %v1108_v16 = vadd.f32 %v2985_v7, %v1072_v61 }
 0x2b1   : > { %2049 = vmatprep.mubr.bf16.mxu0 %v1128_v48  ;;  %v1132_v51 = vpack.c.bf16 %v1105_v33, %v1104_v42  ;;  %v1109_v2 = vadd.f32 %v2985_v7, %v1073_v40  ;;  %v1110_v3 = vadd.f32 %v2985_v7, %v1074_v56  ;;  %v1111_v44 = vadd.f32 %v2985_v7, %v1075_v46 }
 0x2b2   : > { %2050 = vmatmul.mubr.bf16.vlgmr.msra.gmra.mrb[32].mxu0 %v1129_v10  ;;  %v1133_v6 = vpack.c.bf16 %v1107_v20, %v1106_v29  ;;  %v1112_v19 = vadd.f32 %v2985_v7, %v1076_v63  ;;  %v1113_v27 = vadd.f32 %v2985_v7, %v1077_v53  ;;  %v1114_v31 = vadd.f32 %v2985_v7, %v1078_v13 }
 0x2b3   : > { %2053 = vmatprep.mubr.bf16.mxu0 %v1130_v57  ;;  %v1134_v32 = vpack.c.bf16 %v1109_v2, %v1108_v16  ;;  %v1135_v47 = vpack.c.bf16 %v1111_v44, %v1110_v3  ;;  %v1115_v49 = vadd.f32 %v2985_v7, %v1079_v12  ;;  %v1116_v62 = vadd.f32 %v2985_v7, %v1080_v25 }
 0x2b4   : > { %v1136_v0 = vpack.c.bf16 %v1113_v27, %v1112_v19  ;;  %v1117_v1 = vadd.f32 %v2985_v7, %v1081_v18  ;;  %v1118_v50 = vadd.f32 %v2985_v7, %v1082_v11  ;;  %v1119_v60 = vadd.f32 %v2985_v7, %v1083_v36  ;;  %2082 = vmatpush3.bf16.msra.mxu0 %v2869_v43 }
 0x2b5   : > { %v1137_v38 = vpack.c.bf16 %v1115_v49, %v1114_v31  ;;  %v1120_v35 = vadd.f32 %v2985_v7, %v1084_v23  ;;  %v1121_v61 = vadd.f32 %v2985_v7, %v1085_v37  ;;  %v1122_v40 = vadd.f32 %v2985_v7, %v1086_v26  ;;  %2083 = vmatprep.subr.bf16.mxu0 %v2879_v5 }
 0x2b6   : > { %v1138_v56 = vpack.c.bf16 %v1117_v1, %v1116_v62  ;;  %v1139_v46 = vpack.c.bf16 %v1119_v60, %v1118_v50  ;;  %v1123_v63 = vadd.f32 %v2985_v7, %v1087_v52  ;;  %v1124_v53 = vadd.f32 %v2985_v7, %v1088_v34 }
 0x2b7   : > { %v1140_v13 = vpack.c.bf16 %v1121_v61, %v1120_v35  ;;  %v1125_v12 = vadd.f32 %v2985_v7, %v2969_v14  ;;  %v1126_v43 = vadd.f32 %v2985_v7, %v1090_v17  ;;  %v1127_v25 = vadd.f32 %v2985_v7, %v1091_v9 }
 0x2b8   : > { %v1141_v18 = vpack.c.bf16 %v1123_v63, %v1122_v40  ;;  %2084 = vmatpush3.bf16.msra.mxu0 %v2879_v5  ;;  %v2209_v5 = vld [vmem:[%s3217_s1 + $0xf0] sm:$0xff]  }
 0x2b9   : > { %v1142_v11 = vpack.c.bf16 %v1125_v12, %v1124_v53  ;;  %v1143_v36 = vpack.c.bf16 %v1127_v25, %v1126_v43  ;;  %2085 = vmatprep.subr.bf16.mxu0 %v2900_v54  ;;  %2135 = vmatprep.subr.bf16.mxu1 %v2209_v5 }
 0x2ba   : > { %2054 = vmatmul.mubr.bf16.gmra.mrb[36].mxu0 %v1131_v24  ;;  %2143 = vmatpush3.bf16.msra.mxu1 %v2209_v5 }
 0x2bb   : > { %2057 = vmatprep.mubr.bf16.mxu0 %v1132_v51 }
 0x2bc   : > { %2086 = vmatpush3.bf16.msra.mxu0 %v2900_v54  ;;  %v2210_v54 = vld [vmem:[%s3217_s1 + $0xf8] sm:$0xff]  }
 0x2bd   : > { %2087 = vmatprep.subr.bf16.mxu0 %v2918_v15  ;;  %2136 = vmatprep.subr.bf16.mxu1 %v2210_v54 }
 0x2be   : > { %2144 = vmatpush3.bf16.msra.mxu1 %v2210_v54 }
 0x2c0   : > { %2088 = vmatpush3.bf16.msra.mxu0 %v2918_v15  ;;  %v1163_v15 = vsub.s32 6, %v2433_v59 }
 0x2c1   : > { %2089 = vmatprep.subr.bf16.mxu0 %v2938_v8 }
 0x2c2   : > { %2058 = vmatmul.mubr.bf16.gmra.mrb[40].mxu0 %v1133_v6 }
 0x2c3   : > { %2061 = vmatprep.mubr.bf16.mxu0 %v1134_v32 }
 0x2c4   : > { %2090 = vmatpush3.bf16.msra.mxu0 %v2938_v8  ;;  %v3057_v8 = vrot.slane %v2965_v28, %v1163_v15 }
 0x2c5   : > { %2091 = vmatprep.subr.bf16.mxu0 %v2950_v55 }
 0x2c8   : > { %2092 = vmatpush3.bf16.msra.mxu0 %v2950_v55 }
 0x2c9   : > { %2093 = vmatprep.subr.bf16.mxu0 %v2209_v5 }
 0x2ca   : > { %2062 = vmatmul.mubr.bf16.gmra.mrb[44].mxu0 %v1135_v47 }
 0x2cb   : > { %2065 = vmatprep.mubr.bf16.mxu0 %v1136_v0 }
 0x2cc   : > { %2094 = vmatpush3.bf16.msra.mxu0 %v2209_v5 }
 0x2cd   : > { %2095 = vmatprep.subr.bf16.mxu0 %v2210_v54 }
 0x2d0   : > { %2096 = vmatpush3.bf16.msra.mxu0 %v2210_v54 }
 0x2d2   : > { %2066 = vmatmul.mubr.bf16.gmra.mrb[48].mxu0 %v1137_v38 }
 0x2d3   : > { %2069 = vmatprep.mubr.bf16.mxu0 %v1138_v56 }
 0x2da   : > { %2070 = vmatmul.mubr.bf16.gmra.mrb[52].mxu0 %v1139_v46 }
 0x2db   : > { %2073 = vmatprep.mubr.bf16.mxu0 %v1140_v13 }
 0x2e2   : > { %2074 = vmatmul.mubr.bf16.gmra.mrb[56].mxu0 %v1141_v18 }
 0x2e3   : > { %2077 = vmatprep.mubr.bf16.mxu0 %v1142_v11 }
 0x2ea   : > { %2078 = vmatmul.mubr.bf16.gmra.mrb[60].mxu0 %v1143_v36 }
 0x385   : > { %v2051_v55 = vpop.f32.mrb[32].mxu0 }
 0x386   : > { %v1256_v14 = vadd.f32 %v2051_v55, %v3057_v8  ;;  %v1247_v7 = vpop.f32.mrb[33].mxu0 }
 0x387   : > { %v1248_v23 = vadd.f32 %v1247_v7, %v3057_v8  ;;  %v2052_v37 = vpop.f32.mrb[34].mxu0 }
 0x388   : > { %v1259_v26 = vadd.f32 %v2052_v37, %v3057_v8  ;;  %v1250_v52 = vpop.f32.mrb[35].mxu0  ;;  %v1376_v17 = vmax.f32 %v1256_v14, 0.0 }
 0x389   : > { %v1251_v34 = vadd.f32 %v1250_v52, %v3057_v8  ;;  %v1374_v39 = vmax.f32 %v1248_v23, 0.0 }
 0x38a   : > { %v1377_v9 = vmax.f32 %v1259_v26, 0.0 }
 0x38b   : > { %v1375_v22 = vmax.f32 %v1251_v34, 0.0 }
 0x38c   : > { %v1407_v41 = vpack.c.bf16 %v1377_v9, %v1376_v17 }
 0x38d   : > { %v1406_v58 = vpack.c.bf16 %v1375_v22, %v1374_v39  ;;  %v2055_v21 = vpop.f32.mrb[36].mxu0 }
 0x38e   : > { %v1272_v45 = vadd.f32 %v2055_v21, %v3057_v8  ;;  %v1263_v30 = vpop.f32.mrb[37].mxu0 }
 0x38f   : > { %v1264_v4 = vadd.f32 %v1263_v30, %v3057_v8  ;;  %v2056_v42 = vpop.f32.mrb[38].mxu0  ;;  %2097 = vmatprep.mubr.bf16.mxu0 %v1406_v58 }
 0x390   : > { %v1275_v10 = vadd.f32 %v2056_v42, %v3057_v8  ;;  %v1266_v48 = vpop.f32.mrb[39].mxu0  ;;  %2098 = vmatmul.mubr.bf16.vlgmr.msra.gmra.mrb[64].mxu0 %v1407_v41  ;;  %v1380_v29 = vmax.f32 %v1272_v45, 0.0 }
 0x391   : > { %v1267_v33 = vadd.f32 %v1266_v48, %v3057_v8  ;;  %v1378_v24 = vmax.f32 %v1264_v4, 0.0 }
 0x392   : > { %v1381_v57 = vmax.f32 %v1275_v10, 0.0 }
 0x393   : > { %v1379_v20 = vmax.f32 %v1267_v33, 0.0 }
 0x394   : > { %v1409_v16 = vpack.c.bf16 %v1381_v57, %v1380_v29 }
 0x395   : > { %v1408_v51 = vpack.c.bf16 %v1379_v20, %v1378_v24  ;;  %v2059_v2 = vpop.f32.mrb[40].mxu0 }
 0x396   : > { %v1288_v3 = vadd.f32 %v2059_v2, %v3057_v8  ;;  %v1279_v44 = vpop.f32.mrb[41].mxu0 }
 0x397   : > { %v1280_v6 = vadd.f32 %v1279_v44, %v3057_v8  ;;  %v2060_v19 = vpop.f32.mrb[42].mxu0  ;;  %2101 = vmatprep.mubr.bf16.mxu1 %v1408_v51 }
 0x398   : > { %v1291_v27 = vadd.f32 %v2060_v19, %v3057_v8  ;;  %v1282_v31 = vpop.f32.mrb[43].mxu0  ;;  %2102 = vmatmul.mubr.bf16.vlgmr.msra.gmra.mrb[32].mxu1 %v1409_v16  ;;  %v1384_v47 = vmax.f32 %v1288_v3, 0.0 }
 0x399   : > { %v1283_v32 = vadd.f32 %v1282_v31, %v3057_v8  ;;  %v1382_v62 = vmax.f32 %v1280_v6, 0.0 }
 0x39a   : > { %v1385_v49 = vmax.f32 %v1291_v27, 0.0 }
 0x39b   : > { %v1383_v0 = vmax.f32 %v1283_v32, 0.0 }
 0x39c   : > { %v1411_v1 = vpack.c.bf16 %v1385_v49, %v1384_v47 }
 0x39d   : > { %v1410_v50 = vpack.c.bf16 %v1383_v0, %v1382_v62  ;;  %v2063_v60 = vpop.f32.mrb[44].mxu0 }
 0x39e   : > { %v1304_v38 = vadd.f32 %v2063_v60, %v3057_v8  ;;  %v1295_v35 = vpop.f32.mrb[45].mxu0 }
 0x39f   : > { %v1296_v61 = vadd.f32 %v1295_v35, %v3057_v8  ;;  %v2064_v40 = vpop.f32.mrb[46].mxu0  ;;  %2105 = vmatprep.mubr.bf16.mxu1 %v1410_v50 }
 0x3a0   : > { %v1307_v56 = vadd.f32 %v2064_v40, %v3057_v8  ;;  %v1298_v46 = vpop.f32.mrb[47].mxu0  ;;  %2106 = vmatmul.mubr.bf16.gmra.mrb[36].mxu1 %v1411_v1  ;;  %v1388_v53 = vmax.f32 %v1304_v38, 0.0 }
 0x3a1   : > { %v1299_v63 = vadd.f32 %v1298_v46, %v3057_v8  ;;  %v1386_v12 = vmax.f32 %v1296_v61, 0.0 }
 0x3a2   : > { %v1389_v13 = vmax.f32 %v1307_v56, 0.0 }
 0x3a3   : > { %v1387_v43 = vmax.f32 %v1299_v63, 0.0 }
 0x3a4   : > { %v1413_v25 = vpack.c.bf16 %v1389_v13, %v1388_v53  ;;  %v1441_v13 = vsub.s32 7, %v2433_v59 }
 0x3a5   : > { %v1412_v18 = vpack.c.bf16 %v1387_v43, %v1386_v12  ;;  %v2067_v11 = vpop.f32.mrb[48].mxu0 }
 0x3a6   : > { %v1320_v36 = vadd.f32 %v2067_v11, %v3057_v8  ;;  %v1311_v5 = vpop.f32.mrb[49].mxu0  ;;  %v3094_v12 = vrot.slane %v2965_v28, %v1441_v13 }
 0x3a7   : > { %v1312_v54 = vadd.f32 %v1311_v5, %v3057_v8  ;;  %v2068_v15 = vpop.f32.mrb[50].mxu0  ;;  %2109 = vmatprep.mubr.bf16.mxu1 %v1412_v18 }
 0x3a8   : > { %v1323_v55 = vadd.f32 %v2068_v15, %v3057_v8  ;;  %v1314_v14 = vpop.f32.mrb[51].mxu0  ;;  %2110 = vmatmul.mubr.bf16.gmra.mrb[40].mxu1 %v1413_v25  ;;  %v1392_v23 = vmax.f32 %v1320_v36, 0.0 }
 0x3a9   : > { %v1315_v7 = vadd.f32 %v1314_v14, %v3057_v8  ;;  %v1390_v26 = vmax.f32 %v1312_v54, 0.0 }
 0x3aa   : > { %v1393_v37 = vmax.f32 %v1323_v55, 0.0 }
 0x3ab   : > { %v1391_v52 = vmax.f32 %v1315_v7, 0.0 }
 0x3ac   : > { %v1415_v34 = vpack.c.bf16 %v1393_v37, %v1392_v23 }
 0x3ad   : > { %v1414_v17 = vpack.c.bf16 %v1391_v52, %v1390_v26  ;;  %v2071_v9 = vpop.f32.mrb[52].mxu0 }
 0x3ae   : > { %v1336_v39 = vadd.f32 %v2071_v9, %v3057_v8  ;;  %v1327_v22 = vpop.f32.mrb[53].mxu0 }
 0x3af   : > { %v1328_v41 = vadd.f32 %v1327_v22, %v3057_v8  ;;  %v2072_v58 = vpop.f32.mrb[54].mxu0  ;;  %2113 = vmatprep.mubr.bf16.mxu1 %v1414_v17 }
 0x3b0   : > { %v1339_v21 = vadd.f32 %v2072_v58, %v3057_v8  ;;  %v1330_v45 = vpop.f32.mrb[55].mxu0  ;;  %2114 = vmatmul.mubr.bf16.gmra.mrb[44].mxu1 %v1415_v34  ;;  %v1396_v4 = vmax.f32 %v1336_v39, 0.0 }
 0x3b1   : > { %v1331_v30 = vadd.f32 %v1330_v45, %v3057_v8  ;;  %v1394_v10 = vmax.f32 %v1328_v41, 0.0 }
 0x3b2   : > { %v1397_v42 = vmax.f32 %v1339_v21, 0.0 }
 0x3b3   : > { %v1395_v48 = vmax.f32 %v1331_v30, 0.0 }
 0x3b4   : > { %v1417_v33 = vpack.c.bf16 %v1397_v42, %v1396_v4 }
 0x3b5   : > { %v1416_v29 = vpack.c.bf16 %v1395_v48, %v1394_v10  ;;  %v2075_v57 = vpop.f32.mrb[56].mxu0 }
 0x3b6   : > { %v1352_v24 = vadd.f32 %v2075_v57, %v3057_v8  ;;  %v1343_v20 = vpop.f32.mrb[57].mxu0 }
 0x3b7   : > { %v1344_v16 = vadd.f32 %v1343_v20, %v3057_v8  ;;  %v2076_v51 = vpop.f32.mrb[58].mxu0  ;;  %2117 = vmatprep.mubr.bf16.mxu1 %v1416_v29 }
 0x3b8   : > { %v1355_v2 = vadd.f32 %v2076_v51, %v3057_v8  ;;  %v1346_v3 = vpop.f32.mrb[59].mxu0  ;;  %2118 = vmatmul.mubr.bf16.gmra.mrb[48].mxu1 %v1417_v33  ;;  %v1400_v6 = vmax.f32 %v1352_v24, 0.0 }
 0x3b9   : > { %v1347_v44 = vadd.f32 %v1346_v3, %v3057_v8  ;;  %v1398_v27 = vmax.f32 %v1344_v16, 0.0 }
 0x3ba   : > { %v1401_v19 = vmax.f32 %v1355_v2, 0.0 }
 0x3bb   : > { %v1399_v31 = vmax.f32 %v1347_v44, 0.0 }
 0x3bc   : > { %v1419_v32 = vpack.c.bf16 %v1401_v19, %v1400_v6 }
 0x3bd   : > { %v1418_v47 = vpack.c.bf16 %v1399_v31, %v1398_v27  ;;  %v2079_v49 = vpop.f32.mrb[60].mxu0 }
 0x3be   : > { %v1368_v62 = vadd.f32 %v2079_v49, %v3057_v8  ;;  %v1359_v0 = vpop.f32.mrb[61].mxu0 }
 0x3bf   : > { %v1360_v1 = vadd.f32 %v1359_v0, %v3057_v8  ;;  %v2080_v50 = vpop.f32.mrb[62].mxu0  ;;  %2121 = vmatprep.mubr.bf16.mxu1 %v1418_v47 }
 0x3c0   : > { %v1371_v60 = vadd.f32 %v2080_v50, %v3057_v8  ;;  %v1362_v38 = vpop.f32.mrb[63].mxu0  ;;  %2122 = vmatmul.mubr.bf16.gmra.mrb[52].mxu1 %v1419_v32  ;;  %v1404_v61 = vmax.f32 %v1368_v62, 0.0 }
 0x3c1   : > { %v1363_v35 = vadd.f32 %v1362_v38, %v3057_v8  ;;  %v1402_v56 = vmax.f32 %v1360_v1, 0.0 }
 0x3c2   : > { %v1405_v40 = vmax.f32 %v1371_v60, 0.0 }
 0x3c3   : > { %v1403_v46 = vmax.f32 %v1363_v35, 0.0 }
 0x3c4   : > { %v1421_v63 = vpack.c.bf16 %v1405_v40, %v1404_v61 }
 0x3c5   : > { %v1420_v53 = vpack.c.bf16 %v1403_v46, %v1402_v56 }
 0x3c7   : > { %2125 = vmatprep.mubr.bf16.mxu1 %v1420_v53 }
 0x3c8   : > { %2126 = vmatmul.mubr.bf16.gmra.mrb[56].mxu1 %v1421_v63 }
 0x463   : > { %v2099_v43 = vpop.f32.mrb[64].mxu0 }
 0x464   : > { %v1534_v25 = vadd.f32 %v2099_v43, %v3094_v12  ;;  %v1525_v8 = vpop.f32.mrb[65].mxu0 }
 0x465   : > { %v1526_v18 = vadd.f32 %v1525_v8, %v3094_v12  ;;  %v2100_v11 = vpop.f32.mrb[66].mxu0 }
 0x466   : > { %1654 = vst [vmem:[%s3100_s4 + $0x10] sm:$0xff] %v1534_v25  ;;  %v1537_v59 = vadd.f32 %v2100_v11, %v3094_v12  ;;  %v1528_v28 = vpop.f32.mrb[67].mxu0 }
 0x467   : > { %1652 = vst [vmem:[%s3100_s4] sm:$0xff] %v1526_v18  ;;  %v1529_v36 = vadd.f32 %v1528_v28, %v3094_v12 }
 0x468   : > { %1655 = vst [vmem:[%s3100_s4 + $0x18] sm:$0xff] %v1537_v59 }
 0x469   : > { %1653 = vst [vmem:[%s3100_s4 + $0x8] sm:$0xff] %v1529_v36 }
 0x46b   : > { %v2103_v5 = vpop.f32.mrb[32].mxu1 }
 0x46c   : > { %v1550_v54 = vadd.f32 %v2103_v5, %v3094_v12  ;;  %v1541_v15 = vpop.f32.mrb[33].mxu1 }
 0x46d   : > { %v1542_v55 = vadd.f32 %v1541_v15, %v3094_v12  ;;  %v2104_v14 = vpop.f32.mrb[34].mxu1 }
 0x46e   : > { %1658 = vst [vmem:[%s3100_s4 + $0x30] sm:$0xff] %v1550_v54  ;;  %v1553_v7 = vadd.f32 %v2104_v14, %v3094_v12  ;;  %v1544_v23 = vpop.f32.mrb[35].mxu1 }
 0x46f   : > { %1656 = vst [vmem:[%s3100_s4 + $0x20] sm:$0xff] %v1542_v55  ;;  %v1545_v37 = vadd.f32 %v1544_v23, %v3094_v12 }
 0x470   : > { %1659 = vst [vmem:[%s3100_s4 + $0x38] sm:$0xff] %v1553_v7 }
 0x471   : > { %1657 = vst [vmem:[%s3100_s4 + $0x28] sm:$0xff] %v1545_v37 }
 0x473   : > { %v2107_v26 = vpop.f32.mrb[36].mxu1 }
 0x474   : > { %v1566_v52 = vadd.f32 %v2107_v26, %v3094_v12  ;;  %v1557_v34 = vpop.f32.mrb[37].mxu1 }
 0x475   : > { %v1558_v17 = vadd.f32 %v1557_v34, %v3094_v12  ;;  %v2108_v9 = vpop.f32.mrb[38].mxu1 }
 0x476   : > { %1662 = vst [vmem:[%s3100_s4 + $0x50] sm:$0xff] %v1566_v52  ;;  %v1569_v39 = vadd.f32 %v2108_v9, %v3094_v12  ;;  %v1560_v22 = vpop.f32.mrb[39].mxu1 }
 0x477   : > { %1660 = vst [vmem:[%s3100_s4 + $0x40] sm:$0xff] %v1558_v17  ;;  %v1561_v41 = vadd.f32 %v1560_v22, %v3094_v12 }
 0x478   : > { %1663 = vst [vmem:[%s3100_s4 + $0x58] sm:$0xff] %v1569_v39 }
 0x479   : > { %1661 = vst [vmem:[%s3100_s4 + $0x48] sm:$0xff] %v1561_v41 }
 0x47b   : > { %v2111_v58 = vpop.f32.mrb[40].mxu1 }
 0x47c   : > { %v1582_v21 = vadd.f32 %v2111_v58, %v3094_v12  ;;  %v1573_v45 = vpop.f32.mrb[41].mxu1 }
 0x47d   : > { %v1574_v30 = vadd.f32 %v1573_v45, %v3094_v12  ;;  %v2112_v4 = vpop.f32.mrb[42].mxu1 }
 0x47e   : > { %1666 = vst [vmem:[%s3100_s4 + $0x70] sm:$0xff] %v1582_v21  ;;  %v1585_v42 = vadd.f32 %v2112_v4, %v3094_v12  ;;  %v1576_v10 = vpop.f32.mrb[43].mxu1 }
 0x47f   : > { %1664 = vst [vmem:[%s3100_s4 + $0x60] sm:$0xff] %v1574_v30  ;;  %v1577_v48 = vadd.f32 %v1576_v10, %v3094_v12 }
 0x480   : > { %1667 = vst [vmem:[%s3100_s4 + $0x78] sm:$0xff] %v1585_v42 }
 0x481   : > { %1665 = vst [vmem:[%s3100_s4 + $0x68] sm:$0xff] %v1577_v48 }
 0x483   : > { %v2115_v33 = vpop.f32.mrb[44].mxu1 }
 0x484   : > { %v1598_v29 = vadd.f32 %v2115_v33, %v3094_v12  ;;  %v1589_v57 = vpop.f32.mrb[45].mxu1 }
 0x485   : > { %v1590_v24 = vadd.f32 %v1589_v57, %v3094_v12  ;;  %v2116_v20 = vpop.f32.mrb[46].mxu1 }
 0x486   : > { %1670 = vst [vmem:[%s3100_s4 + $0x90] sm:$0xff] %v1598_v29  ;;  %v1601_v16 = vadd.f32 %v2116_v20, %v3094_v12  ;;  %v1592_v51 = vpop.f32.mrb[47].mxu1 }
 0x487   : > { %1668 = vst [vmem:[%s3100_s4 + $0x80] sm:$0xff] %v1590_v24  ;;  %v1593_v2 = vadd.f32 %v1592_v51, %v3094_v12 }
 0x488   : > { %1671 = vst [vmem:[%s3100_s4 + $0x98] sm:$0xff] %v1601_v16 }
 0x489   : > { %1669 = vst [vmem:[%s3100_s4 + $0x88] sm:$0xff] %v1593_v2 }
 0x48b   : > { %v2119_v3 = vpop.f32.mrb[48].mxu1 }
 0x48c   : > { %v1614_v44 = vadd.f32 %v2119_v3, %v3094_v12  ;;  %v1605_v6 = vpop.f32.mrb[49].mxu1 }
 0x48d   : > { %v1606_v19 = vadd.f32 %v1605_v6, %v3094_v12  ;;  %v2120_v27 = vpop.f32.mrb[50].mxu1 }
 0x48e   : > { %1674 = vst [vmem:[%s3100_s4 + $0xb0] sm:$0xff] %v1614_v44  ;;  %v1617_v31 = vadd.f32 %v2120_v27, %v3094_v12  ;;  %v1608_v32 = vpop.f32.mrb[51].mxu1 }
 0x48f   : > { %1672 = vst [vmem:[%s3100_s4 + $0xa0] sm:$0xff] %v1606_v19  ;;  %v1609_v47 = vadd.f32 %v1608_v32, %v3094_v12 }
 0x490   : > { %1675 = vst [vmem:[%s3100_s4 + $0xb8] sm:$0xff] %v1617_v31 }
 0x491   : > { %1673 = vst [vmem:[%s3100_s4 + $0xa8] sm:$0xff] %v1609_v47 }
 0x493   : > { %v2123_v49 = vpop.f32.mrb[52].mxu1 }
 0x494   : > { %v1630_v62 = vadd.f32 %v2123_v49, %v3094_v12  ;;  %v1621_v0 = vpop.f32.mrb[53].mxu1 }
 0x495   : > { %v1622_v1 = vadd.f32 %v1621_v0, %v3094_v12  ;;  %v2124_v50 = vpop.f32.mrb[54].mxu1 }
 0x496   : > { %1678 = vst [vmem:[%s3100_s4 + $0xd0] sm:$0xff] %v1630_v62  ;;  %v1633_v60 = vadd.f32 %v2124_v50, %v3094_v12  ;;  %v1624_v38 = vpop.f32.mrb[55].mxu1 }
 0x497   : > { %1676 = vst [vmem:[%s3100_s4 + $0xc0] sm:$0xff] %v1622_v1  ;;  %v1625_v35 = vadd.f32 %v1624_v38, %v3094_v12 }
 0x498   : > { %1679 = vst [vmem:[%s3100_s4 + $0xd8] sm:$0xff] %v1633_v60 }
 0x499   : > { %1677 = vst [vmem:[%s3100_s4 + $0xc8] sm:$0xff] %v1625_v35 }
 0x49b   : > { %v2127_v61 = vpop.f32.mrb[56].mxu1 }
 0x49c   : > { %v1646_v40 = vadd.f32 %v2127_v61, %v3094_v12  ;;  %v1637_v56 = vpop.f32.mrb[57].mxu1 }
 0x49d   : > { %v1638_v46 = vadd.f32 %v1637_v56, %v3094_v12  ;;  %v2128_v63 = vpop.f32.mrb[58].mxu1 }
 0x49e   : > { %1682 = vst [vmem:[%s3100_s4 + $0xf0] sm:$0xff] %v1646_v40  ;;  %v1649_v53 = vadd.f32 %v2128_v63, %v3094_v12  ;;  %v1640_v13 = vpop.f32.mrb[59].mxu1 }
 0x49f   : > { %1680 = vst [vmem:[%s3100_s4 + $0xe0] sm:$0xff] %v1638_v46  ;;  %v1641_v43 = vadd.f32 %v1640_v13, %v3094_v12 }
 0x4a0   : > { %1683 = vst [vmem:[%s3100_s4 + $0xf8] sm:$0xff] %v1649_v53 }
 0x4a1   : > { %1681 = vst [vmem:[%s3100_s4 + $0xe8] sm:$0xff] %v1641_v43 }
 0x4a2   : > { %2229 = shalt.err (!%p2226_p3)
}
 0x4a3   : > { %s2230_s20 = scalar_lea.hbm %s3165_s9, 4096  ;;  %s2234_s26 = scalar_lea.hbm %s3219_s3, 16384 }
 0x4a4   : > { %p2231_p4 = scmp.ne.s32.totalorder %s3165_s9, %s2230_s20  ;;  %p2235_p9 = scmp.lt.u32.totalorder %s3165_s9, %s3219_s3 }
 0x4a5   : > { %p2236_p10 = scmp.lt.u32.totalorder %s2234_s26, %s2230_s20  ;;  %p2238_p12 = scmp.lt.u32.totalorder %s2230_s20, %s3165_s9 }
 0x4a6   : > { %p2232_p7 = pnand %p2231_p4, %p2341_p5 }
 0x4a7   : > { %p2237_p11 = por %p2236_p10, %p2235_p9 }
 0x4a8   : > { %p2233_p8 = pneg %p2232_p7 }
 0x4a9   : > { %p2239_p13 = por %p2238_p12, %p2237_p11 }
 0x4ab   : > { %p2240_p0 = pnand %p2239_p13, %p2233_p8 }
 0x4ad   : > { %2243 = shalt.err (!%p2240_p0)
}
 0x4ae   : > { %s2281_s29 = smov 128   ;;  %s2282_s30 = smov 8  }
 0x4af   : > { %2146 = dma.vmem_to_hbm [thread:$0]  (%p2341_p5), %s3167_s6, 4096, %s3165_s9, %s3175_s16, %s2281_s29, %s2281_s29, %s2282_s30  }
 0x4b0 PF: > { %p2152_p1 = scmp.ge.s32.totalorder %s2278_s15, 2  ;;  %s1713_s4 = sand.u32 1, %s2266_s12  }
 0x4b1   : > { %s1714_s5 = scalar_lea.sflag [#allocation3], %s1713_s4 }
 0x4b2   : > { %p2149_p2 = pnand %p2152_p1, %p2345_p6 }
 0x4b4   : > { %2261 = dma.done.wait (!%p2149_p2), %s1714_s5, 4096  }
 0x4b5   : > { %2263 = vsyncadd (!%p2149_p2), %s1714_s5, 4294963200  ;;  %p13_p3 = scmp.ge.s32.totalorder %s2328_s18, 6   ;;  %s3222_s12 = smov %s2270_s13 }
 0x4b6   : > { %s3223_s13 = smov %s2274_s14  ;;  %s3224_s14 = smov %s2339_s21 }
 0x4b7   : > { %s3225_s15 = smov %s2328_s18  ;;  %15 = sbr.rel (!%p13_p3) target bundleno = 3 (0x3), region = 70 }
 0x4be   :  { %1719 = vsyncpa [#allocation3], 1 }
 0x4bf   :  { %1721 = vsyncpa [#allocation3 + $0x1], 1 }

</bundles_post_ra>
